<compile_context>
chip_gen: v7x
topology: tpu7x:2x2x1
jax: 0.10.0
libtpu: 0.0.40
codegen_flags: <defaults>
</compile_context>

<pallas_src>
import functools

import jax
import jax.numpy as jnp
from jax.experimental import pallas as pl
from jax.experimental.pallas import tpu as pltpu

LN_EPS = 1e-5       # nn.LayerNorm default eps
ATTN_EPS = 1e-8     # eps added to the attention denominator in compute_attention
INV_SQRT2 = 0.7071067811865476


def _layernorm(x, gamma, beta):
    # PyTorch LayerNorm: biased variance over the last dim, f32 math.
    mean = jnp.mean(x, axis=-1, keepdims=True)
    var = jnp.mean((x - mean) ** 2, axis=-1, keepdims=True)
    return (x - mean) * jax.lax.rsqrt(var + LN_EPS) * gamma + beta


def _gelu(x):
    # Exact GELU (nn.GELU default): 0.5 * x * (1 + erf(x / sqrt(2)))
    return 0.5 * x * (1.0 + jax.lax.erf(x * INV_SQRT2))


def transformer_layer_kernel(
    x_ref,
    ln1_g_ref, ln1_b_ref, wqkv_ref, wo_ref, bo_ref,
    ln2_g_ref, ln2_b_ref, w1_ref, b1_ref, w2_ref, b2_ref,
    norm_g_ref, norm_b_ref,
    o_ref,
    act_ref,
    *, heads, dim_head,
):
    l = pl.program_id(1)
    depth = pl.num_programs(1)
    b_tile, N, D = x_ref.shape
    inner = heads * dim_head
    M = b_tile * N

    # Load the activation into the persistent VMEM carry on the first layer
    # of this batch tile.
    @pl.when(l == 0)
    def _():
        act_ref[...] = x_ref[...].reshape(M, D).astype(jnp.float32)

    x = act_ref[...]

    # ---------------- Attention block (pre-LN) ----------------
    h = _layernorm(x, ln1_g_ref[0], ln1_b_ref[0])
    # One fused QKV matmul over the whole tile; scale already folded into the
    # Q columns of wqkv (offline).  bf16 operands, f32 accumulation.
    qkv = jnp.dot(h.astype(jnp.bfloat16), wqkv_ref[0],
                  preferred_element_type=jnp.float32)            # (M, 3*inner)

    head_outs = []
    for hh in range(heads):                      # small static loop over heads
        qo = hh * dim_head
        q_h = qkv[:, qo:qo + dim_head].reshape(b_tile, N, dim_head)
        k_h = qkv[:, inner + qo:inner + qo + dim_head].reshape(b_tile, N, dim_head)
        v_h = qkv[:, 2 * inner + qo:2 * inner + qo + dim_head].reshape(b_tile, N, dim_head)

        # scores[b,q,k] = sum_d q[b,q,d] * k[b,k,d]   (batched over batch dim)
        s = jnp.einsum('bqd,bkd->bqk',
                       q_h.astype(jnp.bfloat16), k_h.astype(jnp.bfloat16),
                       preferred_element_type=jnp.float32)       # (b_tile,N,N)
        # attn_type='softmax': exp -> row-sum (+eps) -> divide.  Stable form
        # that is algebraically identical to exp(s) / (sum(exp(s)) + eps).
        m = jnp.max(s, axis=-1, keepdims=True)
        numer = jnp.exp(s - m)
        denom = jnp.sum(numer, axis=-1, keepdims=True) + ATTN_EPS * jnp.exp(-m)
        attn = numer * pl.reciprocal(denom, approx=True)

        out_h = jnp.einsum('bqk,bkd->bqd',
                           attn.astype(jnp.bfloat16), v_h.astype(jnp.bfloat16),
                           preferred_element_type=jnp.float32)   # (b_tile,N,dh)
        head_outs.append(out_h)

    # 'b h n d -> b n (h d)': concatenate head outputs along the feature axis.
    out = jnp.concatenate(head_outs, axis=-1).reshape(M, inner)
    attn_out = jnp.dot(out.astype(jnp.bfloat16), wo_ref[0],
                       preferred_element_type=jnp.float32) + bo_ref[0]
    x = x + attn_out                                             # residual

    # ---------------- FeedForward block (pre-LN) ----------------
    h2 = _layernorm(x, ln2_g_ref[0], ln2_b_ref[0])
    h2 = jnp.dot(h2.astype(jnp.bfloat16), w1_ref[0],
                 preferred_element_type=jnp.float32) + b1_ref[0]
    h2 = _gelu(h2)
    h2 = jnp.dot(h2.astype(jnp.bfloat16), w2_ref[0],
                 preferred_element_type=jnp.float32) + b2_ref[0]
    x = x + h2                                                   # residual

    act_ref[...] = x

    # Final LayerNorm (self.norm) fused into the last layer step.
    @pl.when(l == depth - 1)
    def _():
        y = _layernorm(x, norm_g_ref[...], norm_b_ref[...])
        o_ref[...] = y.reshape(b_tile, N, D).astype(o_ref.dtype)


WEIGHT_ORDER = ("ln1_g", "ln1_b", "wqkv", "wo", "bo",
                "ln2_g", "ln2_b", "w1", "b1", "w2", "b2")


def _vmem_budget_bytes():
    # Use the real per-core VMEM capacity when the query is available
    # (128 MiB v5e/v6e, 64 MiB v7x); otherwise a conservative value that is
    # safe on every generation.
    try:
        cap = int(pltpu.get_tpu_info().vmem_capacity_bytes)
        if cap > 0:
            return (cap * 3) // 4
    except Exception:
        pass
    return 48 * 1024 * 1024


def _choose_b_tile(B, N, D, inner, mlp_dim, budget):
    """Largest batch tile whose working set fits the VMEM budget, keeping at
    least 2 parallel batch tiles (when B >= 2) so both v7x TCs have work."""
    layer_w = 2 * (D * 3 * inner + inner * D + D * mlp_dim + mlp_dim * D)   # bf16
    layer_w += 4 * (6 * D + mlp_dim)                                        # f32 LN/bias
    fixed = 2 * layer_w + 2 * 4 * D          # double-buffered layer weights + final LN
    best = 1
    for bt in range(1, B + 1):
        if B % bt:
            continue
        if B >= 2 and B // bt < 2:
            continue
        act = bt * N * D * 4                      # persistent f32 activation carry
        io = 2 * 2 * bt * N * D * 4               # x / out blocks (double buffered)
        tmp = bt * N * (3 * inner + mlp_dim + 2 * inner) * 4 + 3 * bt * N * N * 4
        if fixed + act + io + tmp <= budget:
            best = bt
    return best


def transformer_forward(x, packed, *, heads, dim_head):
    B, N, D = x.shape
    depth = packed["wqkv"].shape[0]
    inner = heads * dim_head
    mlp_dim = packed["w1"].shape[-1]

    budget = _vmem_budget_bytes()
    b_tile = _choose_b_tile(B, N, D, inner, mlp_dim, budget)
    num_tiles = B // b_tile

    in_x_spec = pl.BlockSpec((b_tile, N, D), lambda b, l: (b, 0, 0))
    out_spec = pl.BlockSpec((b_tile, N, D), lambda b, l: (b, 0, 0))

    def layer_spec(arr):
        nd = arr.ndim
        return pl.BlockSpec((1,) + arr.shape[1:],
                            lambda b, l: (l,) + (0,) * (nd - 1))

    def const_spec(arr):
        nd = arr.ndim
        # Tiny final-LN params; kept with a constant-index full-array spec
        # (double-buffer overhead is a few hundred bytes, negligible).
        return pl.BlockSpec(arr.shape, lambda b, l: (0,) * nd)

    weights = [packed[name] for name in WEIGHT_ORDER]
    in_specs = ([in_x_spec] + [layer_spec(w) for w in weights]
                + [const_spec(packed["norm_g"]), const_spec(packed["norm_b"])])

    kernel = functools.partial(transformer_layer_kernel,
                               heads=heads, dim_head=dim_head)
    return pl.pallas_call(
        kernel,
        out_shape=jax.ShapeDtypeStruct((B, N, D), x.dtype),
        grid=(num_tiles, depth),
        in_specs=in_specs,
        out_specs=out_spec,
        scratch_shapes=[pltpu.VMEM((b_tile * N, D), jnp.float32)],
        compiler_params=pltpu.CompilerParams(
            dimension_semantics=("parallel", "arbitrary"),
            vmem_limit_bytes=budget,
        ),
    )(x, *weights, packed["norm_g"], packed["norm_b"])


def init_params(key, dim, depth, heads, dim_head, mlp_dim):
    """Raw per-layer parameters; linear weights in (in, out) layout: y = x @ W + b."""
    inner = heads * dim_head
    layers = []
    for _ in range(depth):
        key, k0, k1, k2, k3 = jax.random.split(key, 5)
        layers.append(dict(
            ln1_g=jnp.ones((dim,), jnp.float32),
            ln1_b=jnp.zeros((dim,), jnp.float32),
            wqkv=0.02 * jax.random.normal(k0, (dim, 3 * inner), jnp.float32),
            wo=0.02 * jax.random.normal(k1, (inner, dim), jnp.float32),
            bo=jnp.zeros((dim,), jnp.float32),
            ln2_g=jnp.ones((dim,), jnp.float32),
            ln2_b=jnp.zeros((dim,), jnp.float32),
            w1=0.02 * jax.random.normal(k2, (dim, mlp_dim), jnp.float32),
            b1=jnp.zeros((mlp_dim,), jnp.float32),
            w2=0.02 * jax.random.normal(k3, (mlp_dim, dim), jnp.float32),
            b2=jnp.zeros((dim,), jnp.float32),
        ))
    return dict(layers=layers,
                norm_g=jnp.ones((dim,), jnp.float32),
                norm_b=jnp.zeros((dim,), jnp.float32))


def prepare_params(raw, *, heads, dim_head):
    """One-time offline weight transform:
       * stack per-layer weights along a leading depth axis (streamed per layer),
       * keep to_qkv fused as a single (dim, 3*inner) matmul weight,
       * fold the attention scale dim_head**-0.5 into the Q columns,
       * store matmul weights in bf16 (MXU-native); LN params / biases stay f32."""
    layers = raw["layers"]
    depth = len(layers)
    dim = raw["norm_g"].shape[0]
    mlp_dim = layers[0]["b1"].shape[0]
    inner = heads * dim_head
    scale = dim_head ** -0.5

    def stack(fn, dtype=jnp.float32):
        return jnp.stack([fn(l) for l in layers], axis=0).astype(dtype)

    def fold_scale(wqkv):
        return jnp.concatenate([wqkv[:, :inner] * scale, wqkv[:, inner:]], axis=1)

    return dict(
        ln1_g=stack(lambda l: l["ln1_g"]).reshape(depth, 1, dim),
        ln1_b=stack(lambda l: l["ln1_b"]).reshape(depth, 1, dim),
        wqkv=stack(lambda l: fold_scale(l["wqkv"]), jnp.bfloat16),
        wo=stack(lambda l: l["wo"], jnp.bfloat16),
        bo=stack(lambda l: l["bo"]).reshape(depth, 1, dim),
        ln2_g=stack(lambda l: l["ln2_g"]).reshape(depth, 1, dim),
        ln2_b=stack(lambda l: l["ln2_b"]).reshape(depth, 1, dim),
        w1=stack(lambda l: l["w1"], jnp.bfloat16),
        b1=stack(lambda l: l["b1"]).reshape(depth, 1, mlp_dim),
        w2=stack(lambda l: l["w2"], jnp.bfloat16),
        b2=stack(lambda l: l["b2"]).reshape(depth, 1, dim),
        norm_g=raw["norm_g"].reshape(1, dim),
        norm_b=raw["norm_b"].reshape(1, dim),
    )


if __name__ == "__main__":
    # Small shapes consistent with Transformer(dim, depth, heads, dim_head, mlp_dim)
    B, N = 2, 8
    dim, depth, heads, dim_head, mlp_dim = 32, 2, 4, 8, 64

    key = jax.random.PRNGKey(0)
    kx, kp = jax.random.split(key)
    x = jax.random.normal(kx, (B, N, dim), jnp.float32)
    raw = init_params(kp, dim, depth, heads, dim_head, mlp_dim)
    packed = prepare_params(raw, heads=heads, dim_head=dim_head)

    out = transformer_forward(x, packed, heads=heads, dim_head=dim_head)
    out = jax.block_until_ready(out)
    assert out.shape == (B, N, dim) and out.dtype == jnp.float32
    assert bool(jnp.all(jnp.isfinite(out)))
    print("KERNEL_OK")
</pallas_src>

<mosaic_0001>
module attributes {stable_mosaic.version = 11 : i64} {
  func.func @transformer_layer_kernel(%arg0: i32, %arg1: i32, %arg2: memref<1x8x32xf32, #tpu.memory_space<vmem>>, %arg3: memref<1x1x32xf32, #tpu.memory_space<vmem>>, %arg4: memref<1x1x32xf32, #tpu.memory_space<vmem>>, %arg5: memref<1x32x96xbf16, #tpu.memory_space<vmem>>, %arg6: memref<1x32x32xbf16, #tpu.memory_space<vmem>>, %arg7: memref<1x1x32xf32, #tpu.memory_space<vmem>>, %arg8: memref<1x1x32xf32, #tpu.memory_space<vmem>>, %arg9: memref<1x1x32xf32, #tpu.memory_space<vmem>>, %arg10: memref<1x32x64xbf16, #tpu.memory_space<vmem>>, %arg11: memref<1x1x64xf32, #tpu.memory_space<vmem>>, %arg12: memref<1x64x32xbf16, #tpu.memory_space<vmem>>, %arg13: memref<1x1x32xf32, #tpu.memory_space<vmem>>, %arg14: memref<1x32xf32, #tpu.memory_space<vmem>>, %arg15: memref<1x32xf32, #tpu.memory_space<vmem>>, %arg16: memref<1x8x32xf32, #tpu.memory_space<vmem>>, %arg17: memref<8x32xf32, #tpu.memory_space<vmem>>) attributes {dimension_semantics = [#tpu.dimension_semantics<parallel>, #tpu.dimension_semantics<arbitrary>], iteration_bounds = array<i64: 2, 2>, scalar_prefetch = 0 : i64, scratch_operands = 1 : i64, tpu.core_type = #tpu.core_type<tc>, window_params = [{transform_indices = @transform_0, window_bounds = array<i64: 1, 8, 32>}, {transform_indices = @transform_1, window_bounds = array<i64: 1, 1, 32>}, {transform_indices = @transform_2, window_bounds = array<i64: 1, 1, 32>}, {transform_indices = @transform_3, window_bounds = array<i64: 1, 32, 96>}, {transform_indices = @transform_4, window_bounds = array<i64: 1, 32, 32>}, {transform_indices = @transform_5, window_bounds = array<i64: 1, 1, 32>}, {transform_indices = @transform_6, window_bounds = array<i64: 1, 1, 32>}, {transform_indices = @transform_7, window_bounds = array<i64: 1, 1, 32>}, {transform_indices = @transform_8, window_bounds = array<i64: 1, 32, 64>}, {transform_indices = @transform_9, window_bounds = array<i64: 1, 1, 64>}, {transform_indices = @transform_10, window_bounds = array<i64: 1, 64, 32>}, {transform_indices = @transform_11, window_bounds = array<i64: 1, 1, 32>}, {pipeline_mode = #tpu.pipeline_mode<synchronous>, transform_indices = @transform_12, window_bounds = array<i64: 1, 32>}, {pipeline_mode = #tpu.pipeline_mode<synchronous>, transform_indices = @transform_13, window_bounds = array<i64: 1, 32>}, {transform_indices = @transform_14, window_bounds = array<i64: 1, 8, 32>}]} {
    %c0_i32 = arith.constant 0 : i32
    %0 = arith.cmpi eq, %arg1, %c0_i32 : i32
    %1 = arith.extui %0 : i1 to i32
    %c0_i32_0 = arith.constant 0 : i32
    %2 = arith.cmpi ne, %1, %c0_i32_0 : i32
    scf.if %2 {
      %c0_78 = arith.constant 0 : index
      %c0_79 = arith.constant 0 : index
      %c0_80 = arith.constant 0 : index
      %212 = vector.load %arg2[%c0_78, %c0_79, %c0_80] : memref<1x8x32xf32, #tpu.memory_space<vmem>>, vector<1x8x32xf32>
      %213 = vector.shape_cast %212 : vector<1x8x32xf32> to vector<8x32xf32>
      %c0_81 = arith.constant 0 : index
      %c0_82 = arith.constant 0 : index
      %214 = vector.load %arg17[%c0_81, %c0_82] : memref<8x32xf32, #tpu.memory_space<vmem>>, vector<8x32xf32>
      tpu.vector_store %arg17[%c0_81, %c0_82], %213 {strides = array<i32>} : memref<8x32xf32, #tpu.memory_space<vmem>>, vector<8x32xf32>,
    } else {
    }
    %c0 = arith.constant 0 : index
    %c0_1 = arith.constant 0 : index
    %3 = vector.load %arg17[%c0, %c0_1] : memref<8x32xf32, #tpu.memory_space<vmem>>, vector<8x32xf32>
    %c0_2 = arith.constant 0 : index
    %c0_3 = arith.constant 0 : index
    %c0_4 = arith.constant 0 : index
    %4 = vector.load %arg3[%c0_2, %c0_3, %c0_4] : memref<1x1x32xf32, #tpu.memory_space<vmem>>, vector<1x1x32xf32>
    %5 = vector.shape_cast %4 : vector<1x1x32xf32> to vector<1x32xf32>
    %c0_5 = arith.constant 0 : index
    %c0_6 = arith.constant 0 : index
    %c0_7 = arith.constant 0 : index
    %6 = vector.load %arg4[%c0_5, %c0_6, %c0_7] : memref<1x1x32xf32, #tpu.memory_space<vmem>>, vector<1x1x32xf32>
    %7 = vector.shape_cast %6 : vector<1x1x32xf32> to vector<1x32xf32>
    %cst = arith.constant dense<0.000000e+00> : vector<8xf32>
    %8 = vector.multi_reduction <add>, %3, %cst [1] : vector<8x32xf32> to vector<8xf32>
    %9 = vector.shape_cast %8 : vector<8xf32> to vector<8x1xf32>
    %cst_8 = arith.constant 3.200000e+01 : f32
    %10 = vector.broadcast %cst_8 : f32 to vector<8x1xf32>
    %11 = arith.divf %9, %10 : vector<8x1xf32>
    %12 = vector.broadcast %11 : vector<8x1xf32> to vector<8x32xf32>
    %13 = arith.subf %3, %12 : vector<8x32xf32>
    %14 = arith.mulf %13, %13 : vector<8x32xf32>
    %cst_9 = arith.constant dense<0.000000e+00> : vector<8xf32>
    %15 = vector.multi_reduction <add>, %14, %cst_9 [1] : vector<8x32xf32> to vector<8xf32>
    %16 = vector.shape_cast %15 : vector<8xf32> to vector<8x1xf32>
    %cst_10 = arith.constant 3.200000e+01 : f32
    %17 = vector.broadcast %cst_10 : f32 to vector<8x1xf32>
    %18 = arith.divf %16, %17 : vector<8x1xf32>
    %19 = vector.broadcast %11 : vector<8x1xf32> to vector<8x32xf32>
    %20 = arith.subf %3, %19 : vector<8x32xf32>
    %cst_11 = arith.constant 9.99999974E-6 : f32
    %21 = vector.broadcast %cst_11 : f32 to vector<8x1xf32>
    %22 = arith.addf %18, %21 : vector<8x1xf32>
    %23 = math.rsqrt %22 : vector<8x1xf32>
    %24 = vector.broadcast %23 : vector<8x1xf32> to vector<8x32xf32>
    %25 = arith.mulf %20, %24 : vector<8x32xf32>
    %26 = vector.broadcast %5 : vector<1x32xf32> to vector<8x32xf32>
    %27 = arith.mulf %25, %26 : vector<8x32xf32>
    %28 = vector.broadcast %7 : vector<1x32xf32> to vector<8x32xf32>
    %29 = arith.addf %27, %28 : vector<8x32xf32>
    %30 = arith.truncf %29 : vector<8x32xf32> to vector<8x32xbf16>
    %c0_12 = arith.constant 0 : index
    %c0_13 = arith.constant 0 : index
    %c0_14 = arith.constant 0 : index
    %31 = vector.load %arg5[%c0_12, %c0_13, %c0_14] : memref<1x32x96xbf16, #tpu.memory_space<vmem>>, vector<1x32x96xbf16>
    %32 = vector.shape_cast %31 : vector<1x32x96xbf16> to vector<32x96xbf16>
    %cst_15 = arith.constant dense<0.000000e+00> : vector<8x96xf32>
    %33 = tpu.matmul %30, %32, %cst_15 {dimension_numbers = #tpu.dot_dimension_numbers<[1], [0], [0], [1], [0, 0, 1, 1], [], []>} : vector<8x32xbf16>, vector<32x96xbf16>, vector<8x96xf32> -> vector<8x96xf32>
    %34 = vector.extract_strided_slice %33 {offsets = [0, 0], sizes = [8, 8], strides = [1, 1]} : vector<8x96xf32> to vector<8x8xf32>
    %35 = vector.shape_cast %34 : vector<8x8xf32> to vector<1x8x8xf32>
    %36 = vector.extract_strided_slice %33 {offsets = [0, 32], sizes = [8, 8], strides = [1, 1]} : vector<8x96xf32> to vector<8x8xf32>
    %37 = vector.shape_cast %36 : vector<8x8xf32> to vector<1x8x8xf32>
    %38 = vector.extract_strided_slice %33 {offsets = [0, 64], sizes = [8, 8], strides = [1, 1]} : vector<8x96xf32> to vector<8x8xf32>
    %39 = vector.shape_cast %38 : vector<8x8xf32> to vector<1x8x8xf32>
    %40 = arith.truncf %35 : vector<1x8x8xf32> to vector<1x8x8xbf16>
    %41 = arith.truncf %37 : vector<1x8x8xf32> to vector<1x8x8xbf16>
    "tpu.trace_start"() <{level = 10 : i32, message = "bqd,bkd->bqk"}> : () -> ()
    %cst_16 = arith.constant dense<0.000000e+00> : vector<1x8x8xf32>
    %42 = tpu.matmul %40, %41, %cst_16 {dimension_numbers = #tpu.dot_dimension_numbers<[2], [2], [1], [1], [0, 0, 0, 1, 1, 1], [0], [0]>} : vector<1x8x8xbf16>, vector<1x8x8xbf16>, vector<1x8x8xf32> -> vector<1x8x8xf32>
    "tpu.trace_stop"() : () -> ()
    %cst_17 = arith.constant dense<0xFF800000> : vector<1x8xf32>
    %43 = vector.multi_reduction <maximumf>, %42, %cst_17 [2] : vector<1x8x8xf32> to vector<1x8xf32>
    %44 = vector.shape_cast %43 : vector<1x8xf32> to vector<1x8x1xf32>
    %45 = vector.broadcast %44 : vector<1x8x1xf32> to vector<1x8x8xf32>
    %46 = arith.subf %42, %45 : vector<1x8x8xf32>
    %47 = math.exp %46 : vector<1x8x8xf32>
    %cst_18 = arith.constant dense<0.000000e+00> : vector<1x8xf32>
    %48 = vector.multi_reduction <add>, %47, %cst_18 [2] : vector<1x8x8xf32> to vector<1x8xf32>
    %49 = vector.shape_cast %48 : vector<1x8xf32> to vector<1x8x1xf32>
    %cst_19 = arith.constant 0.000000e+00 : f32
    %50 = vector.broadcast %cst_19 : f32 to vector<1x8x1xf32>
    %51 = arith.subf %50, %44 : vector<1x8x1xf32>
    %52 = math.exp %51 : vector<1x8x1xf32>
    %cst_20 = arith.constant 9.99999993E-9 : f32
    %53 = vector.broadcast %cst_20 : f32 to vector<1x8x1xf32>
    %54 = arith.mulf %53, %52 : vector<1x8x1xf32>
    %55 = arith.addf %49, %54 : vector<1x8x1xf32>
    %56 = tpu.reciprocal %55 {approx = true} : vector<1x8x1xf32> -> vector<1x8x1xf32>
    %57 = vector.broadcast %56 : vector<1x8x1xf32> to vector<1x8x8xf32>
    %58 = arith.mulf %47, %57 : vector<1x8x8xf32>
    %59 = arith.truncf %58 : vector<1x8x8xf32> to vector<1x8x8xbf16>
    %60 = arith.truncf %39 : vector<1x8x8xf32> to vector<1x8x8xbf16>
    "tpu.trace_start"() <{level = 10 : i32, message = "bqk,bkd->bqd"}> : () -> ()
    %cst_21 = arith.constant dense<0.000000e+00> : vector<1x8x8xf32>
    %61 = tpu.matmul %59, %60, %cst_21 {dimension_numbers = #tpu.dot_dimension_numbers<[2], [1], [1], [2], [0, 0, 0, 1, 1, 2], [0], [0]>} : vector<1x8x8xbf16>, vector<1x8x8xbf16>, vector<1x8x8xf32> -> vector<1x8x8xf32>
    "tpu.trace_stop"() : () -> ()
    %62 = vector.extract_strided_slice %33 {offsets = [0, 8], sizes = [8, 8], strides = [1, 1]} : vector<8x96xf32> to vector<8x8xf32>
    %63 = vector.shape_cast %62 : vector<8x8xf32> to vector<1x8x8xf32>
    %64 = vector.extract_strided_slice %33 {offsets = [0, 40], sizes = [8, 8], strides = [1, 1]} : vector<8x96xf32> to vector<8x8xf32>
    %65 = vector.shape_cast %64 : vector<8x8xf32> to vector<1x8x8xf32>
    %66 = vector.extract_strided_slice %33 {offsets = [0, 72], sizes = [8, 8], strides = [1, 1]} : vector<8x96xf32> to vector<8x8xf32>
    %67 = vector.shape_cast %66 : vector<8x8xf32> to vector<1x8x8xf32>
    %68 = arith.truncf %63 : vector<1x8x8xf32> to vector<1x8x8xbf16>
    %69 = arith.truncf %65 : vector<1x8x8xf32> to vector<1x8x8xbf16>
    "tpu.trace_start"() <{level = 10 : i32, message = "bqd,bkd->bqk"}> : () -> ()
    %cst_22 = arith.constant dense<0.000000e+00> : vector<1x8x8xf32>
    %70 = tpu.matmul %68, %69, %cst_22 {dimension_numbers = #tpu.dot_dimension_numbers<[2], [2], [1], [1], [0, 0, 0, 1, 1, 1], [0], [0]>} : vector<1x8x8xbf16>, vector<1x8x8xbf16>, vector<1x8x8xf32> -> vector<1x8x8xf32>
    "tpu.trace_stop"() : () -> ()
    %cst_23 = arith.constant dense<0xFF800000> : vector<1x8xf32>
    %71 = vector.multi_reduction <maximumf>, %70, %cst_23 [2] : vector<1x8x8xf32> to vector<1x8xf32>
    %72 = vector.shape_cast %71 : vector<1x8xf32> to vector<1x8x1xf32>
    %73 = vector.broadcast %72 : vector<1x8x1xf32> to vector<1x8x8xf32>
    %74 = arith.subf %70, %73 : vector<1x8x8xf32>
    %75 = math.exp %74 : vector<1x8x8xf32>
    %cst_24 = arith.constant dense<0.000000e+00> : vector<1x8xf32>
    %76 = vector.multi_reduction <add>, %75, %cst_24 [2] : vector<1x8x8xf32> to vector<1x8xf32>
    %77 = vector.shape_cast %76 : vector<1x8xf32> to vector<1x8x1xf32>
    %cst_25 = arith.constant 0.000000e+00 : f32
    %78 = vector.broadcast %cst_25 : f32 to vector<1x8x1xf32>
    %79 = arith.subf %78, %72 : vector<1x8x1xf32>
    %80 = math.exp %79 : vector<1x8x1xf32>
    %cst_26 = arith.constant 9.99999993E-9 : f32
    %81 = vector.broadcast %cst_26 : f32 to vector<1x8x1xf32>
    %82 = arith.mulf %81, %80 : vector<1x8x1xf32>
    %83 = arith.addf %77, %82 : vector<1x8x1xf32>
    %84 = tpu.reciprocal %83 {approx = true} : vector<1x8x1xf32> -> vector<1x8x1xf32>
    %85 = vector.broadcast %84 : vector<1x8x1xf32> to vector<1x8x8xf32>
    %86 = arith.mulf %75, %85 : vector<1x8x8xf32>
    %87 = arith.truncf %86 : vector<1x8x8xf32> to vector<1x8x8xbf16>
    %88 = arith.truncf %67 : vector<1x8x8xf32> to vector<1x8x8xbf16>
    "tpu.trace_start"() <{level = 10 : i32, message = "bqk,bkd->bqd"}> : () -> ()
    %cst_27 = arith.constant dense<0.000000e+00> : vector<1x8x8xf32>
    %89 = tpu.matmul %87, %88, %cst_27 {dimension_numbers = #tpu.dot_dimension_numbers<[2], [1], [1], [2], [0, 0, 0, 1, 1, 2], [0], [0]>} : vector<1x8x8xbf16>, vector<1x8x8xbf16>, vector<1x8x8xf32> -> vector<1x8x8xf32>
    "tpu.trace_stop"() : () -> ()
    %90 = vector.extract_strided_slice %33 {offsets = [0, 16], sizes = [8, 8], strides = [1, 1]} : vector<8x96xf32> to vector<8x8xf32>
    %91 = vector.shape_cast %90 : vector<8x8xf32> to vector<1x8x8xf32>
    %92 = vector.extract_strided_slice %33 {offsets = [0, 48], sizes = [8, 8], strides = [1, 1]} : vector<8x96xf32> to vector<8x8xf32>
    %93 = vector.shape_cast %92 : vector<8x8xf32> to vector<1x8x8xf32>
    %94 = vector.extract_strided_slice %33 {offsets = [0, 80], sizes = [8, 8], strides = [1, 1]} : vector<8x96xf32> to vector<8x8xf32>
    %95 = vector.shape_cast %94 : vector<8x8xf32> to vector<1x8x8xf32>
    %96 = arith.truncf %91 : vector<1x8x8xf32> to vector<1x8x8xbf16>
    %97 = arith.truncf %93 : vector<1x8x8xf32> to vector<1x8x8xbf16>
    "tpu.trace_start"() <{level = 10 : i32, message = "bqd,bkd->bqk"}> : () -> ()
    %cst_28 = arith.constant dense<0.000000e+00> : vector<1x8x8xf32>
    %98 = tpu.matmul %96, %97, %cst_28 {dimension_numbers = #tpu.dot_dimension_numbers<[2], [2], [1], [1], [0, 0, 0, 1, 1, 1], [0], [0]>} : vector<1x8x8xbf16>, vector<1x8x8xbf16>, vector<1x8x8xf32> -> vector<1x8x8xf32>
    "tpu.trace_stop"() : () -> ()
    %cst_29 = arith.constant dense<0xFF800000> : vector<1x8xf32>
    %99 = vector.multi_reduction <maximumf>, %98, %cst_29 [2] : vector<1x8x8xf32> to vector<1x8xf32>
    %100 = vector.shape_cast %99 : vector<1x8xf32> to vector<1x8x1xf32>
    %101 = vector.broadcast %100 : vector<1x8x1xf32> to vector<1x8x8xf32>
    %102 = arith.subf %98, %101 : vector<1x8x8xf32>
    %103 = math.exp %102 : vector<1x8x8xf32>
    %cst_30 = arith.constant dense<0.000000e+00> : vector<1x8xf32>
    %104 = vector.multi_reduction <add>, %103, %cst_30 [2] : vector<1x8x8xf32> to vector<1x8xf32>
    %105 = vector.shape_cast %104 : vector<1x8xf32> to vector<1x8x1xf32>
    %cst_31 = arith.constant 0.000000e+00 : f32
    %106 = vector.broadcast %cst_31 : f32 to vector<1x8x1xf32>
    %107 = arith.subf %106, %100 : vector<1x8x1xf32>
    %108 = math.exp %107 : vector<1x8x1xf32>
    %cst_32 = arith.constant 9.99999993E-9 : f32
    %109 = vector.broadcast %cst_32 : f32 to vector<1x8x1xf32>
    %110 = arith.mulf %109, %108 : vector<1x8x1xf32>
    %111 = arith.addf %105, %110 : vector<1x8x1xf32>
    %112 = tpu.reciprocal %111 {approx = true} : vector<1x8x1xf32> -> vector<1x8x1xf32>
    %113 = vector.broadcast %112 : vector<1x8x1xf32> to vector<1x8x8xf32>
    %114 = arith.mulf %103, %113 : vector<1x8x8xf32>
    %115 = arith.truncf %114 : vector<1x8x8xf32> to vector<1x8x8xbf16>
    %116 = arith.truncf %95 : vector<1x8x8xf32> to vector<1x8x8xbf16>
    "tpu.trace_start"() <{level = 10 : i32, message = "bqk,bkd->bqd"}> : () -> ()
    %cst_33 = arith.constant dense<0.000000e+00> : vector<1x8x8xf32>
    %117 = tpu.matmul %115, %116, %cst_33 {dimension_numbers = #tpu.dot_dimension_numbers<[2], [1], [1], [2], [0, 0, 0, 1, 1, 2], [0], [0]>} : vector<1x8x8xbf16>, vector<1x8x8xbf16>, vector<1x8x8xf32> -> vector<1x8x8xf32>
    "tpu.trace_stop"() : () -> ()
    %118 = vector.extract_strided_slice %33 {offsets = [0, 24], sizes = [8, 8], strides = [1, 1]} : vector<8x96xf32> to vector<8x8xf32>
    %119 = vector.shape_cast %118 : vector<8x8xf32> to vector<1x8x8xf32>
    %120 = vector.extract_strided_slice %33 {offsets = [0, 56], sizes = [8, 8], strides = [1, 1]} : vector<8x96xf32> to vector<8x8xf32>
    %121 = vector.shape_cast %120 : vector<8x8xf32> to vector<1x8x8xf32>
    %122 = vector.extract_strided_slice %33 {offsets = [0, 88], sizes = [8, 8], strides = [1, 1]} : vector<8x96xf32> to vector<8x8xf32>
    %123 = vector.shape_cast %122 : vector<8x8xf32> to vector<1x8x8xf32>
    %124 = arith.truncf %119 : vector<1x8x8xf32> to vector<1x8x8xbf16>
    %125 = arith.truncf %121 : vector<1x8x8xf32> to vector<1x8x8xbf16>
    "tpu.trace_start"() <{level = 10 : i32, message = "bqd,bkd->bqk"}> : () -> ()
    %cst_34 = arith.constant dense<0.000000e+00> : vector<1x8x8xf32>
    %126 = tpu.matmul %124, %125, %cst_34 {dimension_numbers = #tpu.dot_dimension_numbers<[2], [2], [1], [1], [0, 0, 0, 1, 1, 1], [0], [0]>} : vector<1x8x8xbf16>, vector<1x8x8xbf16>, vector<1x8x8xf32> -> vector<1x8x8xf32>
    "tpu.trace_stop"() : () -> ()
    %cst_35 = arith.constant dense<0xFF800000> : vector<1x8xf32>
    %127 = vector.multi_reduction <maximumf>, %126, %cst_35 [2] : vector<1x8x8xf32> to vector<1x8xf32>
    %128 = vector.shape_cast %127 : vector<1x8xf32> to vector<1x8x1xf32>
    %129 = vector.broadcast %128 : vector<1x8x1xf32> to vector<1x8x8xf32>
    %130 = arith.subf %126, %129 : vector<1x8x8xf32>
    %131 = math.exp %130 : vector<1x8x8xf32>
    %cst_36 = arith.constant dense<0.000000e+00> : vector<1x8xf32>
    %132 = vector.multi_reduction <add>, %131, %cst_36 [2] : vector<1x8x8xf32> to vector<1x8xf32>
    %133 = vector.shape_cast %132 : vector<1x8xf32> to vector<1x8x1xf32>
    %cst_37 = arith.constant 0.000000e+00 : f32
    %134 = vector.broadcast %cst_37 : f32 to vector<1x8x1xf32>
    %135 = arith.subf %134, %128 : vector<1x8x1xf32>
    %136 = math.exp %135 : vector<1x8x1xf32>
    %cst_38 = arith.constant 9.99999993E-9 : f32
    %137 = vector.broadcast %cst_38 : f32 to vector<1x8x1xf32>
    %138 = arith.mulf %137, %136 : vector<1x8x1xf32>
    %139 = arith.addf %133, %138 : vector<1x8x1xf32>
    %140 = tpu.reciprocal %139 {approx = true} : vector<1x8x1xf32> -> vector<1x8x1xf32>
    %141 = vector.broadcast %140 : vector<1x8x1xf32> to vector<1x8x8xf32>
    %142 = arith.mulf %131, %141 : vector<1x8x8xf32>
    %143 = arith.truncf %142 : vector<1x8x8xf32> to vector<1x8x8xbf16>
    %144 = arith.truncf %123 : vector<1x8x8xf32> to vector<1x8x8xbf16>
    "tpu.trace_start"() <{level = 10 : i32, message = "bqk,bkd->bqd"}> : () -> ()
    %cst_39 = arith.constant dense<0.000000e+00> : vector<1x8x8xf32>
    %145 = tpu.matmul %143, %144, %cst_39 {dimension_numbers = #tpu.dot_dimension_numbers<[2], [1], [1], [2], [0, 0, 0, 1, 1, 2], [0], [0]>} : vector<1x8x8xbf16>, vector<1x8x8xbf16>, vector<1x8x8xf32> -> vector<1x8x8xf32>
    "tpu.trace_stop"() : () -> ()
    %146 = tpu.concatenate %61, %89, %117, %145 in 2 : vector<1x8x8xf32>, vector<1x8x8xf32>, vector<1x8x8xf32>, vector<1x8x8xf32> -> vector<1x8x32xf32>
    %147 = vector.shape_cast %146 : vector<1x8x32xf32> to vector<8x32xf32>
    %148 = arith.truncf %147 : vector<8x32xf32> to vector<8x32xbf16>
    %c0_40 = arith.constant 0 : index
    %c0_41 = arith.constant 0 : index
    %c0_42 = arith.constant 0 : index
    %149 = vector.load %arg6[%c0_40, %c0_41, %c0_42] : memref<1x32x32xbf16, #tpu.memory_space<vmem>>, vector<1x32x32xbf16>
    %150 = vector.shape_cast %149 : vector<1x32x32xbf16> to vector<32x32xbf16>
    %cst_43 = arith.constant dense<0.000000e+00> : vector<8x32xf32>
    %151 = tpu.matmul %148, %150, %cst_43 {dimension_numbers = #tpu.dot_dimension_numbers<[1], [0], [0], [1], [0, 0, 1, 1], [], []>} : vector<8x32xbf16>, vector<32x32xbf16>, vector<8x32xf32> -> vector<8x32xf32>
    %c0_44 = arith.constant 0 : index
    %c0_45 = arith.constant 0 : index
    %c0_46 = arith.constant 0 : index
    %152 = vector.load %arg7[%c0_44, %c0_45, %c0_46] : memref<1x1x32xf32, #tpu.memory_space<vmem>>, vector<1x1x32xf32>
    %153 = vector.shape_cast %152 : vector<1x1x32xf32> to vector<1x32xf32>
    %154 = vector.broadcast %153 : vector<1x32xf32> to vector<8x32xf32>
    %155 = arith.addf %151, %154 : vector<8x32xf32>
    %156 = arith.addf %3, %155 : vector<8x32xf32>
    %c0_47 = arith.constant 0 : index
    %c0_48 = arith.constant 0 : index
    %c0_49 = arith.constant 0 : index
    %157 = vector.load %arg8[%c0_47, %c0_48, %c0_49] : memref<1x1x32xf32, #tpu.memory_space<vmem>>, vector<1x1x32xf32>
    %158 = vector.shape_cast %157 : vector<1x1x32xf32> to vector<1x32xf32>
    %c0_50 = arith.constant 0 : index
    %c0_51 = arith.constant 0 : index
    %c0_52 = arith.constant 0 : index
    %159 = vector.load %arg9[%c0_50, %c0_51, %c0_52] : memref<1x1x32xf32, #tpu.memory_space<vmem>>, vector<1x1x32xf32>
    %160 = vector.shape_cast %159 : vector<1x1x32xf32> to vector<1x32xf32>
    %cst_53 = arith.constant dense<0.000000e+00> : vector<8xf32>
    %161 = vector.multi_reduction <add>, %156, %cst_53 [1] : vector<8x32xf32> to vector<8xf32>
    %162 = vector.shape_cast %161 : vector<8xf32> to vector<8x1xf32>
    %cst_54 = arith.constant 3.200000e+01 : f32
    %163 = vector.broadcast %cst_54 : f32 to vector<8x1xf32>
    %164 = arith.divf %162, %163 : vector<8x1xf32>
    %165 = vector.broadcast %164 : vector<8x1xf32> to vector<8x32xf32>
    %166 = arith.subf %156, %165 : vector<8x32xf32>
    %167 = arith.mulf %166, %166 : vector<8x32xf32>
    %cst_55 = arith.constant dense<0.000000e+00> : vector<8xf32>
    %168 = vector.multi_reduction <add>, %167, %cst_55 [1] : vector<8x32xf32> to vector<8xf32>
    %169 = vector.shape_cast %168 : vector<8xf32> to vector<8x1xf32>
    %cst_56 = arith.constant 3.200000e+01 : f32
    %170 = vector.broadcast %cst_56 : f32 to vector<8x1xf32>
    %171 = arith.divf %169, %170 : vector<8x1xf32>
    %172 = vector.broadcast %164 : vector<8x1xf32> to vector<8x32xf32>
    %173 = arith.subf %156, %172 : vector<8x32xf32>
    %cst_57 = arith.constant 9.99999974E-6 : f32
    %174 = vector.broadcast %cst_57 : f32 to vector<8x1xf32>
    %175 = arith.addf %171, %174 : vector<8x1xf32>
    %176 = math.rsqrt %175 : vector<8x1xf32>
    %177 = vector.broadcast %176 : vector<8x1xf32> to vector<8x32xf32>
    %178 = arith.mulf %173, %177 : vector<8x32xf32>
    %179 = vector.broadcast %158 : vector<1x32xf32> to vector<8x32xf32>
    %180 = arith.mulf %178, %179 : vector<8x32xf32>
    %181 = vector.broadcast %160 : vector<1x32xf32> to vector<8x32xf32>
    %182 = arith.addf %180, %181 : vector<8x32xf32>
    %183 = arith.truncf %182 : vector<8x32xf32> to vector<8x32xbf16>
    %c0_58 = arith.constant 0 : index
    %c0_59 = arith.constant 0 : index
    %c0_60 = arith.constant 0 : index
    %184 = vector.load %arg10[%c0_58, %c0_59, %c0_60] : memref<1x32x64xbf16, #tpu.memory_space<vmem>>, vector<1x32x64xbf16>
    %185 = vector.shape_cast %184 : vector<1x32x64xbf16> to vector<32x64xbf16>
    %cst_61 = arith.constant dense<0.000000e+00> : vector<8x64xf32>
    %186 = tpu.matmul %183, %185, %cst_61 {dimension_numbers = #tpu.dot_dimension_numbers<[1], [0], [0], [1], [0, 0, 1, 1], [], []>} : vector<8x32xbf16>, vector<32x64xbf16>, vector<8x64xf32> -> vector<8x64xf32>
    %c0_62 = arith.constant 0 : index
    %c0_63 = arith.constant 0 : index
    %c0_64 = arith.constant 0 : index
    %187 = vector.load %arg11[%c0_62, %c0_63, %c0_64] : memref<1x1x64xf32, #tpu.memory_space<vmem>>, vector<1x1x64xf32>
    %188 = vector.shape_cast %187 : vector<1x1x64xf32> to vector<1x64xf32>
    %189 = vector.broadcast %188 : vector<1x64xf32> to vector<8x64xf32>
    %190 = arith.addf %186, %189 : vector<8x64xf32>
    %cst_65 = arith.constant 5.000000e-01 : f32
    %191 = vector.broadcast %cst_65 : f32 to vector<8x64xf32>
    %192 = arith.mulf %191, %190 : vector<8x64xf32>
    %cst_66 = arith.constant 0.707106769 : f32
    %193 = vector.broadcast %cst_66 : f32 to vector<8x64xf32>
    %194 = arith.mulf %190, %193 : vector<8x64xf32>
    %195 = math.erf %194 : vector<8x64xf32>
    %cst_67 = arith.constant 1.000000e+00 : f32
    %196 = vector.broadcast %cst_67 : f32 to vector<8x64xf32>
    %197 = arith.addf %196, %195 : vector<8x64xf32>
    %198 = arith.mulf %192, %197 : vector<8x64xf32>
    %199 = arith.truncf %198 : vector<8x64xf32> to vector<8x64xbf16>
    %c0_68 = arith.constant 0 : index
    %c0_69 = arith.constant 0 : index
    %c0_70 = arith.constant 0 : index
    %200 = vector.load %arg12[%c0_68, %c0_69, %c0_70] : memref<1x64x32xbf16, #tpu.memory_space<vmem>>, vector<1x64x32xbf16>
    %201 = vector.shape_cast %200 : vector<1x64x32xbf16> to vector<64x32xbf16>
    %cst_71 = arith.constant dense<0.000000e+00> : vector<8x32xf32>
    %202 = tpu.matmul %199, %201, %cst_71 {dimension_numbers = #tpu.dot_dimension_numbers<[1], [0], [0], [1], [0, 0, 1, 1], [], []>} : vector<8x64xbf16>, vector<64x32xbf16>, vector<8x32xf32> -> vector<8x32xf32>
    %c0_72 = arith.constant 0 : index
    %c0_73 = arith.constant 0 : index
    %c0_74 = arith.constant 0 : index
    %203 = vector.load %arg13[%c0_72, %c0_73, %c0_74] : memref<1x1x32xf32, #tpu.memory_space<vmem>>, vector<1x1x32xf32>
    %204 = vector.shape_cast %203 : vector<1x1x32xf32> to vector<1x32xf32>
    %205 = vector.broadcast %204 : vector<1x32xf32> to vector<8x32xf32>
    %206 = arith.addf %202, %205 : vector<8x32xf32>
    %207 = arith.addf %156, %206 : vector<8x32xf32>
    %c0_75 = arith.constant 0 : index
    %c0_76 = arith.constant 0 : index
    %208 = vector.load %arg17[%c0_75, %c0_76] : memref<8x32xf32, #tpu.memory_space<vmem>>, vector<8x32xf32>
    tpu.vector_store %arg17[%c0_75, %c0_76], %207 {strides = array<i32>} : memref<8x32xf32, #tpu.memory_space<vmem>>, vector<8x32xf32>,
    %c1_i32 = arith.constant 1 : i32
    %209 = arith.cmpi eq, %arg1, %c1_i32 : i32
    %210 = arith.extui %209 : i1 to i32
    %c0_i32_77 = arith.constant 0 : i32
    %211 = arith.cmpi ne, %210, %c0_i32_77 : i32
    scf.if %211 {
      %c0_78 = arith.constant 0 : index
      %c0_79 = arith.constant 0 : index
      %212 = vector.load %arg14[%c0_78, %c0_79] : memref<1x32xf32, #tpu.memory_space<vmem>>, vector<1x32xf32>
      %c0_80 = arith.constant 0 : index
      %c0_81 = arith.constant 0 : index
      %213 = vector.load %arg15[%c0_80, %c0_81] : memref<1x32xf32, #tpu.memory_space<vmem>>, vector<1x32xf32>
      %cst_82 = arith.constant dense<0.000000e+00> : vector<8xf32>
      %214 = vector.multi_reduction <add>, %207, %cst_82 [1] : vector<8x32xf32> to vector<8xf32>
      %215 = vector.shape_cast %214 : vector<8xf32> to vector<8x1xf32>
      %cst_83 = arith.constant 3.200000e+01 : f32
      %216 = vector.broadcast %cst_83 : f32 to vector<8x1xf32>
      %217 = arith.divf %215, %216 : vector<8x1xf32>
      %218 = vector.broadcast %217 : vector<8x1xf32> to vector<8x32xf32>
      %219 = arith.subf %207, %218 : vector<8x32xf32>
      %220 = arith.mulf %219, %219 : vector<8x32xf32>
      %cst_84 = arith.constant dense<0.000000e+00> : vector<8xf32>
      %221 = vector.multi_reduction <add>, %220, %cst_84 [1] : vector<8x32xf32> to vector<8xf32>
      %222 = vector.shape_cast %221 : vector<8xf32> to vector<8x1xf32>
      %cst_85 = arith.constant 3.200000e+01 : f32
      %223 = vector.broadcast %cst_85 : f32 to vector<8x1xf32>
      %224 = arith.divf %222, %223 : vector<8x1xf32>
      %225 = vector.broadcast %217 : vector<8x1xf32> to vector<8x32xf32>
      %226 = arith.subf %207, %225 : vector<8x32xf32>
      %cst_86 = arith.constant 9.99999974E-6 : f32
      %227 = vector.broadcast %cst_86 : f32 to vector<8x1xf32>
      %228 = arith.addf %224, %227 : vector<8x1xf32>
      %229 = math.rsqrt %228 : vector<8x1xf32>
      %230 = vector.broadcast %229 : vector<8x1xf32> to vector<8x32xf32>
      %231 = arith.mulf %226, %230 : vector<8x32xf32>
      %232 = vector.broadcast %212 : vector<1x32xf32> to vector<8x32xf32>
      %233 = arith.mulf %231, %232 : vector<8x32xf32>
      %234 = vector.broadcast %213 : vector<1x32xf32> to vector<8x32xf32>
      %235 = arith.addf %233, %234 : vector<8x32xf32>
      %236 = vector.shape_cast %235 : vector<8x32xf32> to vector<1x8x32xf32>
      %c0_87 = arith.constant 0 : index
      %c0_88 = arith.constant 0 : index
      %c0_89 = arith.constant 0 : index
      %237 = vector.load %arg16[%c0_87, %c0_88, %c0_89] : memref<1x8x32xf32, #tpu.memory_space<vmem>>, vector<1x8x32xf32>
      tpu.vector_store %arg16[%c0_87, %c0_88, %c0_89], %236 {strides = array<i32>} : memref<1x8x32xf32, #tpu.memory_space<vmem>>, vector<1x8x32xf32>,
    } else {
    }
    return
  }
  func.func @transform_0(%arg0: i32, %arg1: i32) -> (i32, i32, i32) {
    %c0_i32 = arith.constant 0 : i32
    %c0_i32_0 = arith.constant 0 : i32
    %c0_i32_1 = arith.constant 0 : i32
    return %arg0, %c0_i32, %c0_i32_0 : i32, i32, i32
  }
  func.func @transform_1(%arg0: i32, %arg1: i32) -> (i32, i32, i32) {
    %c0_i32 = arith.constant 0 : i32
    %c0_i32_0 = arith.constant 0 : i32
    %c0_i32_1 = arith.constant 0 : i32
    return %arg1, %c0_i32, %c0_i32_0 : i32, i32, i32
  }
  func.func @transform_2(%arg0: i32, %arg1: i32) -> (i32, i32, i32) {
    %c0_i32 = arith.constant 0 : i32
    %c0_i32_0 = arith.constant 0 : i32
    %c0_i32_1 = arith.constant 0 : i32
    return %arg1, %c0_i32, %c0_i32_0 : i32, i32, i32
  }
  func.func @transform_3(%arg0: i32, %arg1: i32) -> (i32, i32, i32) {
    %c0_i32 = arith.constant 0 : i32
    %c0_i32_0 = arith.constant 0 : i32
    %c0_i32_1 = arith.constant 0 : i32
    return %arg1, %c0_i32, %c0_i32_0 : i32, i32, i32
  }
  func.func @transform_4(%arg0: i32, %arg1: i32) -> (i32, i32, i32) {
    %c0_i32 = arith.constant 0 : i32
    %c0_i32_0 = arith.constant 0 : i32
    %c0_i32_1 = arith.constant 0 : i32
    return %arg1, %c0_i32, %c0_i32_0 : i32, i32, i32
  }
  func.func @transform_5(%arg0: i32, %arg1: i32) -> (i32, i32, i32) {
    %c0_i32 = arith.constant 0 : i32
    %c0_i32_0 = arith.constant 0 : i32
    %c0_i32_1 = arith.constant 0 : i32
    return %arg1, %c0_i32, %c0_i32_0 : i32, i32, i32
  }
  func.func @transform_6(%arg0: i32, %arg1: i32) -> (i32, i32, i32) {
    %c0_i32 = arith.constant 0 : i32
    %c0_i32_0 = arith.constant 0 : i32
    %c0_i32_1 = arith.constant 0 : i32
    return %arg1, %c0_i32, %c0_i32_0 : i32, i32, i32
  }
  func.func @transform_7(%arg0: i32, %arg1: i32) -> (i32, i32, i32) {
    %c0_i32 = arith.constant 0 : i32
    %c0_i32_0 = arith.constant 0 : i32
    %c0_i32_1 = arith.constant 0 : i32
    return %arg1, %c0_i32, %c0_i32_0 : i32, i32, i32
  }
  func.func @transform_8(%arg0: i32, %arg1: i32) -> (i32, i32, i32) {
    %c0_i32 = arith.constant 0 : i32
    %c0_i32_0 = arith.constant 0 : i32
    %c0_i32_1 = arith.constant 0 : i32
    return %arg1, %c0_i32, %c0_i32_0 : i32, i32, i32
  }
  func.func @transform_9(%arg0: i32, %arg1: i32) -> (i32, i32, i32) {
    %c0_i32 = arith.constant 0 : i32
    %c0_i32_0 = arith.constant 0 : i32
    %c0_i32_1 = arith.constant 0 : i32
    return %arg1, %c0_i32, %c0_i32_0 : i32, i32, i32
  }
  func.func @transform_10(%arg0: i32, %arg1: i32) -> (i32, i32, i32) {
    %c0_i32 = arith.constant 0 : i32
    %c0_i32_0 = arith.constant 0 : i32
    %c0_i32_1 = arith.constant 0 : i32
    return %arg1, %c0_i32, %c0_i32_0 : i32, i32, i32
  }
  func.func @transform_11(%arg0: i32, %arg1: i32) -> (i32, i32, i32) {
    %c0_i32 = arith.constant 0 : i32
    %c0_i32_0 = arith.constant 0 : i32
    %c0_i32_1 = arith.constant 0 : i32
    return %arg1, %c0_i32, %c0_i32_0 : i32, i32, i32
  }
  func.func @transform_12(%arg0: i32, %arg1: i32) -> (i32, i32) {
    %c0_i32 = arith.constant 0 : i32
    %c0_i32_0 = arith.constant 0 : i32
    %c0_i32_1 = arith.constant 0 : i32
    return %c0_i32, %c0_i32_0 : i32, i32
  }
  func.func @transform_13(%arg0: i32, %arg1: i32) -> (i32, i32) {
    %c0_i32 = arith.constant 0 : i32
    %c0_i32_0 = arith.constant 0 : i32
    %c0_i32_1 = arith.constant 0 : i32
    return %c0_i32, %c0_i32_0 : i32, i32
  }
  func.func @transform_14(%arg0: i32, %arg1: i32) -> (i32, i32, i32) {
    %c0_i32 = arith.constant 0 : i32
    %c0_i32_0 = arith.constant 0 : i32
    %c0_i32_1 = arith.constant 0 : i32
    return %arg0, %c0_i32, %c0_i32_0 : i32, i32, i32
  }
}

</mosaic_0001>

<bundles_post_ra>
// kernel: tpu_custom_call.1
= control target key start
LH: loop header
LB: loop body
LE: loop exit
PB: predicated region body
PF: predicated region fallthrough
CT: control target
= control target key end

     0   :  { %s3186_s0 = inlined_call_operand.hbm [shape: f32[2,8,32], index: 0, kind: input, shape index: {}]   ;;  %s3187_s1 = inlined_call_operand.vmem [shape: f32[2,1,32], index: 1, kind: input, shape index: {}]   ;;  %s3188_s2 = inlined_call_operand.vmem [shape: f32[2,1,32], index: 2, kind: input, shape index: {}]   ;;  %s3189_s3 = inlined_call_operand.vmem [shape: bf16[2,32,96], index: 3, kind: input, shape index: {}]   ;;  %s3190_s4 = inlined_call_operand.vmem [shape: bf16[2,32,32], index: 4, kind: input, shape index: {}]   ;;  %s3191_s5 = inlined_call_operand.hbm [shape: f32[2,1,32], index: 5, kind: input, shape index: {}]   ;;  %s3192_s6 = inlined_call_operand.hbm [shape: f32[2,1,32], index: 6, kind: input, shape index: {}]   ;;  %s3193_s7 = inlined_call_operand.hbm [shape: f32[2,1,32], index: 7, kind: input, shape index: {}]   ;;  %s3194_s8 = inlined_call_operand.vmem [shape: bf16[2,32,64], index: 8, kind: input, shape index: {}]   ;;  %s3195_s9 = inlined_call_operand.hbm [shape: f32[2,1,64], index: 9, kind: input, shape index: {}]   ;;  %s3196_s10 = inlined_call_operand.vmem [shape: bf16[2,64,32], index: 10, kind: input, shape index: {}]   ;;  %s3197_s11 = inlined_call_operand.vmem [shape: f32[2,1,32], index: 11, kind: input, shape index: {}]   ;;  %s3198_s12 = inlined_call_operand.vmem [shape: f32[1,32], index: 12, kind: input, shape index: {}]   ;;  %s3199_s13 = inlined_call_operand.vmem [shape: f32[1,32], index: 13, kind: input, shape index: {}]   ;;  %s3200_s14 = inlined_call_operand.hbm [shape: f32[2,8,32], index: 14, kind: output, shape index: {}]  }
   0x1   :  { %3222 = sst [smem:[#allocation30_spill]] %s3186_s0 }
   0x2   :  { %3223 = sst [smem:[#allocation31_spill]] %s3187_s1 }
   0x3   :  { %3224 = sst [smem:[#allocation32_spill]] %s3188_s2 }
   0x4   :  { %3225 = sst [smem:[#allocation33_spill]] %s3189_s3 }
   0x5   :  { %3226 = sst [smem:[#allocation34_spill]] %s3190_s4 }
   0x6   :  { %3227 = sst [smem:[#allocation35_spill]] %s3191_s5 }
   0x7   :  { %3228 = sst [smem:[#allocation36_spill]] %s3192_s6 }
   0x8   :  { %3229 = sst [smem:[#allocation37_spill]] %s3193_s7 }
   0x9   :  { %3230 = sst [smem:[#allocation38_spill]] %s3194_s8 }
   0xa   :  { %3231 = sst [smem:[#allocation39_spill]] %s3195_s9 }
   0xb   :  { %3232 = sst [smem:[#allocation40_spill]] %s3196_s10 }
   0xc   :  { %3233 = sst [smem:[#allocation41_spill]] %s3197_s11 }
   0xd   :  { %3234 = sst [smem:[#allocation42_spill]] %s3198_s12 }
   0xe   :  { %3235 = sst [smem:[#allocation43_spill]] %s3199_s13 }
   0xf   :  { %3236 = sst [smem:[#allocation44_spill]] %s3200_s14 }
  0x10   :  { %19 = vsyncpa [#allocation4], 0 }
  0x11   :  { %21 = vsyncpa [#allocation4 + $0x1], 0 }
  0x12   :  { %22 = vsyncpa [#allocation7], 0 }
  0x13   :  { %24 = vsyncpa [#allocation7 + $0x1], 0 }
  0x14   :  { %25 = vsyncpa [#allocation10], 0 }
  0x15   :  { %27 = vsyncpa [#allocation10 + $0x1], 0 }
  0x16   :  { %28 = vsyncpa [#allocation5], 0 }
  0x17   :  { %30 = vsyncpa [#allocation5 + $0x1], 0  ;;  %s2594_s29 = smov 0   ;;  %s2596_s30 = smov 0  }
  0x18   :  { %s2598_s15 = smov 0   ;;  %s2600_s16 = smov 0  }
  0x19   :  { %s2602_s17 = smov 0   ;;  %s2604_s18 = smov 0  }
  0x1a   :  { %s2606_s19 = smov 0   ;;  %s2608_s20 = smov 0  }
  0x1b   :  { %s2610_s21 = smov 0   ;;  %s2612_s22 = smov 0  }
  0x1c   :  { %s2614_s23 = smov 0  }
  0x1d LB: > { %3237 = sst [smem:[#allocation17_spill]] %s2463_s15  ;;  %s45_s24 = sadd.s32 1, %s2487_s21  ;;  %s2495_s23 = sphi %s2614_s23, %s36_s23   ;;  %s2491_s22 = sphi %s2612_s22, %s3312_s22   ;;  %s2487_s21 = sphi %s2610_s21, %s3311_s21   ;;  %s2483_s20 = sphi %s2608_s20, %s3310_s20   ;;  %s2479_s19 = sphi %s2606_s19, %s3309_s19   ;;  %s2475_s18 = sphi %s2604_s18, %s3308_s18   ;;  %s2471_s17 = sphi %s2602_s17, %s3307_s17   ;;  %s2467_s16 = sphi %s2600_s16, %s3306_s16   ;;  %s2463_s15 = sphi %s2598_s15, %s3305_s15   ;;  %s2459_s30 = sphi %s2596_s30, %s3314_s30   ;;  %s2455_s29 = sphi %s2594_s29, %s3313_s29  }
  0x1e   : > { %3238 = sst [smem:[#allocation18_spill]] %s2471_s17  ;;  %p3206_p0 = scmp.eq.s32.totalorder %s2495_s23, 0 }
  0x1f   : > { %3239 = sst [smem:[#allocation19_spill]] %s2475_s18  ;;  %p2651_p1 = scmp.ge.s32.totalorder %s45_s24, 2 }
  0x20   : > { %3240 = sst [smem:[#allocation20_spill]] %s2479_s19  ;;  %s185_s26 = sadd.s32 1, %s2463_s15 }
  0x21   : > { %3241 = sst [smem:[#allocation21_spill]] %s2483_s20  ;;  %p192_p2 = scmp.ne.s32.totalorder %s2463_s15, %s2459_s30 }
  0x22   : > { %3242 = sst [smem:[#allocation22_spill]] %s2487_s21  ;;  %s3316_s24 = smov (%p2651_p1, %s45_s24), 0 }
  0x23   : > { %3243 = sst [smem:[#allocation23_spill]] %s2491_s22  ;;  %p194_p4 = por %p192_p2, %p3206_p0 }
  0x24   : > { %s3244_s25 = scalar_select %p2651_p1, 1, 0 }
  0x25   : > { %3245 = sst [smem:[#allocation24_spill]] %s3316_s24  ;;  %s182_s27 = ssub.s32 %s2487_s21, %s3316_s24 }
  0x26   : > { %p3205_p5 = scmp.lt.s32.totalorder %s2495_s23, 4  ;;  %p183_p6 = scmp.eq.s32.totalorder %s182_s27, 0 }
  0x27   : > { %s3207_s28 = sand.u32 1, %s2495_s23   ;;  %s2671_s14 = sand.u32 1, %s2463_s15  }
  0x28   : > { %s2674_s20 = scalar_select %p183_p6, %s2463_s15, %s185_s26  }
  0x29   : > { %s2677_s13 = sshll.u32 %s2487_s21, 4  ;;  %s3247_s5 = sld [smem:[#allocation35_spill]] }
  0x2a   : > { %3246 = sst [smem:[#allocation25_spill]] %s2674_s20  ;;  %s501_s24 = scalar_lea.vmem [#allocation6], %s2671_s14 }
  0x2b   : > { %s508_s27 = sshll.u32 %s501_s24, 4  ;;  %p2690_p7 = pnand %p3205_p5, %p194_p4  ;;  %s2686_s27 = int_to_ptr.vmem [resolvable:$true] %s508_s27 }
  0x2c   : > { %s2698_s11 = scalar_lea.sflag [#allocation7], %s3207_s28 }
  0x2d   : > { %s3248_s26 = scalar_select %p2690_p7, 1, 0 }
  0x2e   : > { %p2704_p11 = pneg %p2690_p7 }
  0x2f   : > { %s2683_s10 = scalar_lea.hbm %s3247_s5, %s2677_s13  ;;  %s2220_s15 = scalar_lea.hbm %s3247_s5, 32 }
  0x30   : > { %s2215_s12 = scalar_lea.hbm %s2683_s10, 16  ;;  %p2221_p2 = scmp.lt.u32.totalorder %s2683_s10, %s3247_s5 }
  0x31   : > { %p2216_p10 = scmp.ne.s32.totalorder %s2683_s10, %s2215_s12  ;;  %p2222_p4 = scmp.lt.u32.totalorder %s2220_s15, %s2215_s12 }
  0x32   : > { %p2224_p5 = scmp.lt.u32.totalorder %s2215_s12, %s2683_s10 }
  0x33   : > { %p2218_p12 = pnand %p2704_p11, %p2216_p10  ;;  %p2223_p6 = por %p2222_p4, %p2221_p2 }
  0x35   : > { %p2219_p13 = pneg %p2218_p12  ;;  %p2225_p3 = por %p2224_p5, %p2223_p6 }
  0x37   : > { %p2226_p0 = pnand %p2225_p3, %p2219_p13 }
  0x39   : > { %2229 = shalt.err (!%p2226_p0)
}
  0x3a   : > { %s2230_s28 = scalar_lea.vmem %s2686_s27, 16  ;;  %s2497_s20 = smov [#allocation6]  }
  0x3b   : > { %p2231_p10 = scmp.ne.s32.totalorder %s2686_s27, %s2230_s28  ;;  %s2235_s24 = sshll.u32 %s2497_s20, 4  ;;  %s2236_s24 = int_to_ptr.vmem [resolvable:$false] %s2235_s24 }
  0x3c   : > { %s2237_s4 = scalar_lea.vmem %s2236_s24, 32  ;;  %p2238_p9 = scmp.lt.s32.totalorder %s2686_s27, %s2236_s24 }
  0x3d   : > { %p2233_p12 = pnand %p2231_p10, %p2704_p11  ;;  %p2239_p1 = scmp.lt.s32.totalorder %s2237_s4, %s2230_s28 }
  0x3f   : > { %p2234_p8 = pneg %p2233_p12  ;;  %p2240_p2 = por %p2239_p1, %p2238_p9 }
  0x41   : > { %p2241_p4 = pnand %p2240_p2, %p2234_p8 }
  0x43   : > { %2244 = shalt.err (!%p2241_p4)
}
  0x44   : > { %2053 = dma.hbm_to_vmem [thread:$0]  (!%p2690_p7), %s2683_s10, 16, %s2686_s27, %s2698_s11  }
  0x45   : > { %p3250_p0 = scmp.lt.s32.totalorder %s2495_s23, 5  ;;  %p3251_p3 = scmp.ge.s32.totalorder %s2495_s23, 1 }
  0x46   : > { %s3253_s7 = sld [smem:[#allocation37_spill]]  ;;  %s535_s20 = scalar_lea.vmem [#allocation9], %s2671_s14 }
  0x47   : > { %p2732_p5 = pnand %p3251_p3, %p3250_p0  ;;  %s542_s24 = sshll.u32 %s535_s20, 4  ;;  %s543_s24 = int_to_ptr.vmem [resolvable:$true] %s542_s24 }
  0x48   : > { %s3254_s4 = sand.u32 1, %s2495_s23  }
  0x49   : > { %s3252_s8 = scalar_select %p2732_p5, 1, 0 }
  0x4a   : > { %s2745_s10 = scalar_lea.sflag [#allocation10], %s3254_s4 }
  0x4c   : > { %s2740_s12 = scalar_lea.hbm %s3253_s7, %s2677_s13  ;;  %s2250_s15 = scalar_lea.hbm %s3253_s7, 32 }
  0x4d   : > { %s2245_s27 = scalar_lea.hbm %s2740_s12, 16  ;;  %p2251_p13 = scmp.lt.u32.totalorder %s2740_s12, %s3253_s7 }
  0x4e   : > { %p2246_p1 = scmp.ne.s32.totalorder %s2740_s12, %s2245_s27  ;;  %p2252_p6 = scmp.lt.u32.totalorder %s2250_s15, %s2245_s27 }
  0x4f   : > { %p2254_p12 = scmp.lt.u32.totalorder %s2245_s27, %s2740_s12 }
  0x50   : > { %p2248_p8 = pnand %p2246_p1, %p2704_p11  ;;  %p2253_p10 = por %p2252_p6, %p2251_p13 }
  0x52   : > { %p2249_p9 = pneg %p2248_p8  ;;  %p2255_p2 = por %p2254_p12, %p2253_p10 }
  0x54   : > { %p2256_p4 = pnand %p2255_p2, %p2249_p9 }
  0x56   : > { %2259 = shalt.err (!%p2256_p4)
}
  0x57   : > { %s2260_s20 = scalar_lea.vmem %s543_s24, 16  ;;  %s2498_s4 = smov [#allocation9]  }
  0x58   : > { %p2261_p0 = scmp.ne.s32.totalorder %s543_s24, %s2260_s20  ;;  %s2265_s1 = sshll.u32 %s2498_s4, 4  ;;  %s2266_s1 = int_to_ptr.vmem [resolvable:$false] %s2265_s1 }
  0x59   : > { %s2267_s3 = scalar_lea.vmem %s2266_s1, 32  ;;  %p2268_p8 = scmp.lt.s32.totalorder %s543_s24, %s2266_s1 }
  0x5a   : > { %p2263_p3 = pnand %p2261_p0, %p2704_p11  ;;  %p2269_p5 = scmp.lt.s32.totalorder %s2267_s3, %s2260_s20 }
  0x5c   : > { %p2264_p1 = pneg %p2263_p3  ;;  %p2270_p7 = por %p2269_p5, %p2268_p8 }
  0x5e   : > { %p2271_p6 = pnand %p2270_p7, %p2264_p1 }
  0x60   : > { %2274 = shalt.err (!%p2271_p6)
}
  0x61   : > { %p3255_p13 = scmp.ne.s32.totalorder %s3248_s26, 0  ;;  %s2766_s1 = sadd.s32 4294967295, %s2495_s23  }
  0x62   : > { %s1860_s2 = sadd.s32 4294967294, %s2495_s23   ;;  %s48_s5 = sadd.s32 1, %s2491_s22 }
  0x63   : > { %2059 = dma.hbm_to_vmem [thread:$0]  (!%p3255_p13), %s2740_s12, 16, %s543_s24, %s2745_s10  }
  0x64   : > { %p3256_p7 = scmp.ne.s32.totalorder %s3244_s25, 0  ;;  %s55_s27 = sadd.s32 1, %s2475_s18 }
  0x65   : > { %p62_p5 = scmp.ne.s32.totalorder %s2475_s18, %s2471_s17  ;;  %p68_p10 = scmp.ne.s32.totalorder %s2471_s17, %s2467_s16 }
  0x66   : > { %s3318_s5 = smov (!%p3256_p7, %s48_s5), %s2491_s22  ;;  %p3257_p12 = scmp.eq.s32.totalorder %s2495_s23, 0 }
  0x67   : > { %p50_p9 = scmp.ge.s32.totalorder %s3318_s5, 2  ;;  %p69_p4 = scmp.eq.s32.totalorder %s2766_s1, 0 }
  0x68   : > { %p2780_p2 = por %p3257_p12, %p62_p5  ;;  %p3261_p3 = scmp.ne.s32.totalorder %s2459_s30, %s2455_s29 }
  0x69   : > { %s3320_s5 = smov (%p50_p9, %s3318_s5), 0  ;;  %p2790_p0 = por %p69_p4, %p68_p10 }
  0x6a   : > { %3259 = sst [smem:[#allocation26_spill]] %s3320_s5  ;;  %p2797_p1 = por %p3261_p3, %p69_p4 }
  0x6b   : > { %s3260_s25 = scalar_select %p2790_p0, 1, 0 }
  0x6c   : > { %s3262_s24 = scalar_select %p2797_p1, 1, 0 }
  0x6d   : > { %s52_s15 = ssub.s32 %s2491_s22, %s3320_s5  ;;  %p420_p8 = scmp.eq.s32.totalorder %s2766_s1, 3 }
  0x6e   : > { %3263 = sst [smem:[#allocation27_spill]] %s3262_s24  ;;  %p53_p6 = scmp.eq.s32.totalorder %s52_s15, 0 }
  0x6f   : > { %p426_p7 = scmp.eq.s32.totalorder %s1860_s2, 3  ;;  %p2804_p9 = por %p420_p8, %p62_p5 }
  0x70   : > { %s452_s20 = sand.u32 1, %s2475_s18   ;;  %s1864_s7 = sshll.u32 %s2491_s22, 7 }
  0x71   : > { %s3264_s28 = scalar_select %p2804_p9, 1, 0 }
  0x72   : > { %s2810_s4 = scalar_select %p53_p6, %s2475_s18, %s55_s27  }
  0x73   : > { %p2815_p12 = por %p426_p7, %p68_p10  ;;  %s1863_s29 = sshll.u32 %s452_s20, 3 }
  0x74   : > { %3265 = sst [smem:[#allocation28_spill]] %s2810_s4  ;;  %s3268_s0 = sld [smem:[#allocation30_spill]] }
  0x75   : > { %s3266_s3 = scalar_select %p2815_p12, 1, 0 }
  0x76   : > { %s456_s2 = scalar_lea.vmem [#allocation3], %s1863_s29  ;;  %p3269_p5 = scmp.lt.s32.totalorder %s2495_s23, 4 }
  0x77   : > { %3267 = sst [smem:[#allocation29_spill]] %s3266_s3  ;;  %s463_s15 = sshll.u32 %s456_s2, 4  ;;  %s2833_s15 = int_to_ptr.vmem [resolvable:$true] %s463_s15 }
  0x78   : > { %p2829_p4 = pnand %p3269_p5, %p2780_p2  ;;  %s3271_s6 = sld [smem:[#allocation36_spill]] }
  0x79   : > { %s453_s24 = scalar_lea.sflag [#allocation4], %s452_s20 }
  0x7a   : > { %s2823_s5 = scalar_lea.hbm %s3268_s0, %s1864_s7  ;;  %p2277_p3 = pneg %p2829_p4 }
  0x7b   : > { %s2275_s4 = scalar_lea.hbm %s2823_s5, 128  ;;  %s2280_s2 = scalar_lea.hbm %s3268_s0, 256 }
  0x7c   : > { %p2276_p10 = scmp.ne.s32.totalorder %s2823_s5, %s2275_s4  ;;  %p2281_p6 = scmp.lt.u32.totalorder %s2823_s5, %s3268_s0 }
  0x7d   : > { %p2282_p7 = scmp.lt.u32.totalorder %s2280_s2, %s2275_s4  ;;  %p2284_p12 = scmp.lt.u32.totalorder %s2275_s4, %s2823_s5 }
  0x7e   : > { %s2839_s7 = scalar_lea.hbm %s3271_s6, %s2677_s13  ;;  %p2278_p2 = pnand %p2277_p3, %p2276_p10 }
  0x7f   : > { %p2283_p5 = por %p2282_p7, %p2281_p6 }
  0x80   : > { %p2279_p8 = pneg %p2278_p2 }
  0x81   : > { %p2285_p9 = por %p2284_p12, %p2283_p5 }
  0x83   : > { %p2286_p1 = pnand %p2285_p9, %p2279_p8 }
  0x85   : > { %2289 = shalt.err (!%p2286_p1)
}
  0x86   : > { %s2290_s22 = scalar_lea.vmem %s2833_s15, 128  ;;  %s2499_s20 = smov [#allocation3]  }
  0x87   : > { %p2291_p10 = scmp.ne.s32.totalorder %s2833_s15, %s2290_s22  ;;  %s2295_s19 = sshll.u32 %s2499_s20, 4  ;;  %s2296_s19 = int_to_ptr.vmem [resolvable:$false] %s2295_s19 }
  0x88   : > { %s2297_s18 = scalar_lea.vmem %s2296_s19, 256  ;;  %p2298_p13 = scmp.lt.s32.totalorder %s2833_s15, %s2296_s19 }
  0x89   : > { %p2293_p2 = pnand %p2291_p10, %p2277_p3  ;;  %p2299_p6 = scmp.lt.s32.totalorder %s2297_s18, %s2290_s22 }
  0x8b   : > { %p2294_p0 = pneg %p2293_p2  ;;  %p2300_p7 = por %p2299_p6, %p2298_p13 }
  0x8d   : > { %p2301_p12 = pnand %p2300_p7, %p2294_p0 }
  0x8f   : > { %2304 = shalt.err (!%p2301_p12)
}
  0x90   : > { %2050 = dma.hbm_to_vmem [thread:$0]  (!%p2829_p4), %s2823_s5, 128, %s2833_s15, %s453_s24  }
  0x91   : > { %s518_s4 = scalar_lea.vmem [#allocation8], %s2671_s14  ;;  %s3272_s9 = sld [smem:[#allocation39_spill]] }
  0x92   : > { %s525_s3 = sshll.u32 %s518_s4, 4  ;;  %s2305_s22 = scalar_lea.hbm %s2839_s7, 16  ;;  %s526_s3 = int_to_ptr.vmem [resolvable:$true] %s525_s3 }
  0x93   : > { %p2306_p13 = scmp.ne.s32.totalorder %s2839_s7, %s2305_s22  ;;  %s2310_s19 = scalar_lea.hbm %s3271_s6, 32 }
  0x94   : > { %p2311_p9 = scmp.lt.u32.totalorder %s2839_s7, %s3271_s6  ;;  %p2312_p4 = scmp.lt.u32.totalorder %s2310_s19, %s2305_s22 }
  0x95   : > { %p2308_p0 = pnand %p2306_p13, %p2704_p11  ;;  %p2314_p8 = scmp.lt.u32.totalorder %s2305_s22, %s2839_s7 }
  0x96   : > { %p2313_p3 = por %p2312_p4, %p2311_p9 }
  0x97   : > { %s2871_s2 = scalar_lea.hbm %s3272_s9, %s2677_s13  ;;  %p2309_p1 = pneg %p2308_p0 }
  0x98   : > { %p2315_p5 = por %p2314_p8, %p2313_p3 }
  0x9a   : > { %p2316_p10 = pnand %p2315_p5, %p2309_p1 }
  0x9c   : > { %2319 = shalt.err (!%p2316_p10)
}
  0x9d   : > { %s2320_s13 = scalar_lea.vmem %s526_s3, 16  ;;  %s2500_s5 = smov [#allocation8]  }
  0x9e   : > { %p2321_p2 = scmp.ne.s32.totalorder %s526_s3, %s2320_s13  ;;  %s2325_s15 = sshll.u32 %s2500_s5, 4  ;;  %s2326_s15 = int_to_ptr.vmem [resolvable:$false] %s2325_s15 }
  0x9f   : > { %s2327_s24 = scalar_lea.vmem %s2326_s15, 32  ;;  %p2328_p12 = scmp.lt.s32.totalorder %s526_s3, %s2326_s15 }
  0xa0   : > { %p2323_p6 = pnand %p2321_p2, %p2704_p11  ;;  %p2329_p13 = scmp.lt.s32.totalorder %s2327_s24, %s2320_s13 }
  0xa2   : > { %p2324_p7 = pneg %p2323_p6  ;;  %p2330_p0 = por %p2329_p13, %p2328_p12 }
  0xa4   : > { %p2331_p4 = pnand %p2330_p0, %p2324_p7 }
  0xa6   : > { %2334 = shalt.err (!%p2331_p4)
}
  0xa7   : > { %p3273_p9 = scmp.ne.s32.totalorder %s3248_s26, 0  ;;  %s560_s0 = scalar_lea.vmem [#allocation11], %s2671_s14 }
  0xa8   : > { %s567_s4 = sshll.u32 %s560_s0, 4  ;;  %s2335_s12 = scalar_lea.hbm %s2871_s2, 16  ;;  %s568_s4 = int_to_ptr.vmem [resolvable:$true] %s567_s4 }
  0xa9   : > { %2056 = dma.hbm_to_vmem [thread:$0]  (!%p3273_p9), %s2839_s7, 16, %s526_s3, %s2698_s11  }
  0xaa   : > { %p2336_p1 = scmp.ne.s32.totalorder %s2871_s2, %s2335_s12  ;;  %s2340_s27 = scalar_lea.hbm %s3272_s9, 32 }
  0xab   : > { %p2341_p5 = scmp.lt.u32.totalorder %s2871_s2, %s3272_s9  ;;  %p2342_p10 = scmp.lt.u32.totalorder %s2340_s27, %s2335_s12 }
  0xac   : > { %p2338_p3 = pnand %p2336_p1, %p2704_p11  ;;  %p2344_p6 = scmp.lt.u32.totalorder %s2335_s12, %s2871_s2 }
  0xad   : > { %p2343_p2 = por %p2342_p10, %p2341_p5 }
  0xae   : > { %p2339_p8 = pneg %p2338_p3 }
  0xaf   : > { %p2345_p7 = por %p2344_p6, %p2343_p2 }
  0xb1   : > { %p2346_p12 = pnand %p2345_p7, %p2339_p8 }
  0xb3   : > { %2349 = shalt.err (!%p2346_p12)
}
  0xb4   : > { %s2350_s14 = scalar_lea.vmem %s568_s4, 16  ;;  %s2501_s11 = smov [#allocation11]  }
  0xb5   : > { %p2351_p13 = scmp.ne.s32.totalorder %s568_s4, %s2350_s14  ;;  %s2355_s7 = sshll.u32 %s2501_s11, 4  ;;  %s2356_s7 = int_to_ptr.vmem [resolvable:$false] %s2355_s7 }
  0xb6   : > { %s2357_s3 = scalar_lea.vmem %s2356_s7, 32  ;;  %p2358_p1 = scmp.lt.s32.totalorder %s568_s4, %s2356_s7 }
  0xb7   : > { %p2353_p0 = pnand %p2351_p13, %p2704_p11  ;;  %p2359_p3 = scmp.lt.s32.totalorder %s2357_s3, %s2350_s14 }
  0xb9   : > { %p2354_p4 = pneg %p2353_p0  ;;  %p2360_p9 = por %p2359_p3, %p2358_p1 }
  0xbb   : > { %p2361_p5 = pnand %p2360_p9, %p2354_p4 }
  0xbd   : > { %2364 = shalt.err (!%p2361_p5)
}
  0xbe   : > { %p3274_p10 = scmp.ne.s32.totalorder %s3248_s26, 0  ;;  %p3275_p8 = scmp.ne.s32.totalorder %s3252_s8, 0 }
  0xbf   : > { %s2913_s21 = sand.u32 (!%p3275_p8), 1, %s2471_s17   ;;  %p3276_p11 = scmp.ne.s32.totalorder (!%p3275_p8), %s3260_s25, 0 }
  0xc0   : > { %2062 = dma.hbm_to_vmem [thread:$0]  (!%p3274_p10), %s2871_s2, 16, %s568_s4, %s2745_s10  }
  0xc1   : > { %590 = sbr.rel (%p3275_p8) target bundleno = 3123 (0xc33), region = 76  ;;  %s1870_s18 = sshll.u32 (!%p3275_p8), %s2913_s21, 3 }
  0xc2   : > { %s593_s13 = scalar_lea.sflag (!%p3275_p8), [#allocation4], %s2913_s21  ;;  %s596_s5 = scalar_lea.vmem (!%p3275_p8), [#allocation3], %s1870_s18 }
  0xc8   : > { %2438 = dma.done.wait (%p3276_p11), %s593_s13, 128  }
  0xc9   : > { %2440 = vsyncadd (%p3276_p11), %s593_s13, 4294967168  ;;  %s3277_s26 = sld [smem:[#allocation27_spill]]  ;;  %s601_s10 = sand.u32 1, %s2766_s1  }
  0xca   : > { %s2923_s8 = sand.u32 1, %s2459_s30   ;;  %s602_s2 = scalar_lea.sflag [#allocation7], %s601_s10 }
  0xcf   : > { %p3278_p9 = scmp.ne.s32.totalorder %s3277_s26, 0 }
  0xd1   : > { %2442 = dma.done.wait (%p3278_p9), %s602_s2, 32  }
  0xd2   : > { %2444 = vsyncadd (%p3278_p9), %s602_s2, 4294967264  ;;  %s618_s25 = scalar_lea.sflag [#allocation10], %s601_s10 }
  0xd3   : > { %2446 = dma.done.wait (%p3278_p9), %s618_s25, 32  }
  0xd4   : > { %2448 = vsyncadd (%p3278_p9), %s618_s25, 4294967264  ;;  %s3279_s1 = sld [smem:[#allocation20_spill]]  ;;  %s3282_s10 = sld [smem:[#allocation33_spill]] }
  0xd5   : > { %s3283_s24 = sld [smem:[#allocation34_spill]]  ;;  %s3284_s6 = sld [smem:[#allocation38_spill]] }
  0xd6   : > { %s3285_s20 = sld [smem:[#allocation40_spill]]  ;;  %s3286_s17 = sld [smem:[#allocation41_spill]] }
  0xd7   : > { %s628_s26 = scalar_lea.vmem [#allocation11], %s2923_s8 }
  0xda   : > { %p718_p2 = scmp.lt.s32.totalorder %s3279_s1, 1  ;;  %p1880_p6 = scmp.ne.s32.totalorder %s3279_s1, 0 }
  0xdb   : > { %v752_v0 = vld [vmem:[%s596_s5] sm:$0xff] (!%p1880_p6)  ;;  %vm753_vm0 = vcmask (!%p1880_p6), 261120  }
  0xdc   : > { %s2938_s4 = scalar_select %p718_p2, %s3279_s1, 1 }
  0xdd   : > { %751 = sbr.rel (%p1880_p6) target bundleno = 228 (0xe4), region = 100  ;;  %754 = vst.msk [vmem:[#allocation2] sm:$0xff] (!%p1880_p6), %vm753_vm0, %v752_v0 }
  0xde   : > { %s1917_s7 = sshll.u32 %s2938_s4, 4  ;;  %s1920_s3 = sshll.u32 %s2938_s4, 5 }
  0xdf   : > { %s728_s2 = scalar_lea.vmem %s3282_s10, %s1917_s7  ;;  %s2956_s15 = scalar_lea.vmem %s3283_s24, %s1917_s7 }
  0xe0   : > { %s2961_s9 = scalar_lea.vmem %s3284_s6, %s1917_s7  ;;  %s2966_s19 = scalar_lea.vmem %s3285_s20, %s1920_s3 }
  0xe1   : > { %s746_s13 = scalar_lea.vmem %s3286_s17, %s2938_s4  ;;  %s2973_s10 = scalar_lea.vmem [#allocation12], %s1870_s18 }
  0xe4 PF: > { %v2976_v1 = vld [vmem:[#allocation2] sm:$0xff]  ;;  %vm758_vm1 = vcmask 261120   ;;  %v2502_v9 = vmov 0.0   ;;  %vm2503_vm2 = vmmov 0   ;;  %v2174_v10 = vld [vmem:[%s728_s2 + $0x8] sm:$0xff]   ;;  %s3287_s18 = sld [smem:[#allocation31_spill]] }
  0xe5   : > { %v759_v2 = vsel %vm758_vm1, %v2976_v1, 0.0  ;;  %v2173_v8 = vld [vmem:[%s728_s2] sm:$0xff]   ;;  %1951 = vmatprep.subr.bf16.mxu0 %v2502_v9  ;;  %1955 = vmatprep.mubr.msk.bf16.mxu0 %vm2503_vm2, %v2502_v9  ;;  %s3289_s1 = sld [smem:[#allocation32_spill]]  ;;  %s2504_s11 = smov 120   ;;  %vm851_vm3 = vcmask 64512   ;;  %vm920_vm4 = vcmask 1043456  }
  0xe6   : > { %760 = vadd.xlane.f32.xlu0 %v759_v2  ;;  %1952 = vmatpush3.bf16.msra.mxu0 %v2173_v8  ;;  %s2505_s7 = smov 96   ;;  %s2506_s3 = smov 88   ;;  %vm1322_vm5 = vcmask 130048   ;;  %vm1324_vm6 = vcmask 195584   ;;  %vm1535_vm7 = vcmask 523264  }
  0xe7   : > { %1959 = vmatprep.subr.bf16.mxu1 %v2502_v9  ;;  %1953 = vmatprep.subr.bf16.mxu0 %v2502_v9  ;;  %s2507_s2 = smov 80   ;;  %s2508_s25 = smov 112  }
  0xe8   : > { %1961 = vmatprep.mubr.msk.bf16.mxu1 %vm2503_vm2, %v2502_v9  ;;  %s2509_s12 = smov 72   ;;  %s2510_s29 = smov 104  }
  0xe9   : > { %s2511_s22 = smov 64   ;;  %s2512_s20 = smov 56  }
  0xea   : > { %1954 = vmatpush3.bf16.msra.mxu0 %v2174_v10  ;;  %s3288_s5 = scalar_lea.vmem %s3287_s18, %s2938_s4  ;;  %s2513_s14 = smov 48  }
  0xeb   : > { %1965 = vmatprep.subr.bf16.mxu0 %v2502_v9  ;;  %v1881_v15 = vld [vmem:[%s3288_s5] ss:$0 sm:$0xff]  ;;  %s3290_s27 = scalar_lea.vmem %s3289_s1, %s2938_s4  ;;  %s2514_s6 = smov 40  }
  0xec   : > { %v1882_v17 = vld [vmem:[%s3290_s27] ss:$0 sm:$0xff]  ;;  %s2515_s17 = smov 8   ;;  %s2516_s18 = smov 16  }
  0xed   : > { %s2517_s5 = smov 24   ;;  %s3292_s24 = scalar_lea.vmem [#allocation8], %s2923_s8 }
  0xee   : > { %s3293_s0 = scalar_lea.vmem [#allocation9], %s2923_s8 }
 0x173   : > { %v761_v3 = vpop.xlane.xlu0 %760 }
 0x174   : > { %v763_v4 = vmul.f32 0.03125, %v761_v3 }
 0x176   : > { %v764_v5 = vsub.f32 %v2976_v1, %v763_v4 }
 0x178   : > { %v765_v6 = vmul.f32 %v764_v5, %v764_v5 }
 0x17a   : > { %v766_v7 = vsel %vm758_vm1, %v765_v6, 0.0 }
 0x17b   : > { %767 = vadd.xlane.f32.xlu0 %v766_v7 }
 0x208   : > { %v768_v11 = vpop.xlane.xlu0 %767 }
 0x209   : > { %v769_v12 = vmul.f32 0.03125, %v768_v11 }
 0x20b   : > { %v770_v13 = vadd.f32 1e-05, %v769_v12 }
 0x20d   : > { %2183 = vrsqrt.f32 %v770_v13 }
 0x217   : > { %v2184_v14 = vpop.eup %2183 }
 0x218   : > { %v772_v16 = vmul.f32 %v2184_v14, %v764_v5 }
 0x21a   : > { %v779_v18 = vmul.f32 %v1881_v15, %v772_v16 }
 0x21c   : > { %v786_v19 = vadd.f32 %v1882_v17, %v779_v18 }
 0x21e   : > { %v787_v20 = vpack.c.bf16 %v786_v19, %v786_v19 }
 0x220   : > { %1956 = vmatmul.mubr.msk.bf16.vlgmr.msra.gmra.mrb[0].mxu0 %vm758_vm1, %v787_v20 }
 0x221   : > { %1967 = vmatprep.mubr.msk.bf16.mxu0 %vm2503_vm2, %v2502_v9 }
 0x2f3   : > { %v841_v21 = vpop.f32.mrb[0].mxu0 }
 0x2f4   : > { %v3003_v22 = vpack.c.bf16 %v841_v21, %v841_v21  ;;  %v1957_v23 = vpop.f32.mrb[1].mxu0 }
 0x2f5   : > { %v844_v24 = vpop.f32.mrb[2].mxu0 }
 0x2f6   : > { %964 = vrot.lane.b32.xlu0 %v3003_v22, %s2504_s11  ;;  %849 = vrot.lane.b32.xlu1 %v3003_v22, %s2505_s7  ;;  %v1958_v25 = vpop.f32.mrb[3].mxu0 }
 0x2fa   : > { %966 = vrot.lane.b32.xlu1 %v3003_v22, %s2506_s3 }
 0x2fe   : > { %1081 = vrot.lane.b32.xlu1 %v3003_v22, %s2507_s2 }
 0x302   : > { %1079 = vrot.lane.b32.xlu1 %v3003_v22, %s2508_s25 }
 0x306   : > { %1196 = vrot.lane.b32.xlu1 %v3003_v22, %s2509_s12 }
 0x30a   : > { %1194 = vrot.lane.b32.xlu1 %v3003_v22, %s2510_s29 }
 0x368   : > { %v850_v26 = vpop.permute.xlu1 %849  ;;  %v965_v31 = vpop.permute.xlu0 %964 }
 0x369   : > { %v856_v27 = vsel %vm851_vm3, %v850_v26, 0 }
 0x36a   : > { %1960 = vmatpush3.bf16.xpose.msra.mxu1 %v856_v27 }
 0x36b   : > { %1971 = vmatprep.subr.bf16.mxu1 %v2502_v9 }
 0x36c   : > { %v967_v28 = vpop.permute.xlu1 %966 }
 0x36d   : > { %v972_v29 = vsel %vm851_vm3, %v967_v28, 0 }
 0x370   : > { %v1082_v30 = vpop.permute.xlu1 %1081 }
 0x371   : > { %1962 = vmatmul.mubr.msk.bf16.vlgmr.msra.gmra.mrb[0].mxu1 %vm851_vm3, %v3003_v22  ;;  %v1087_v33 = vsel %vm851_vm3, %v1082_v30, 0 }
 0x372   : > { %1972 = vmatpush3.bf16.xpose.msra.mxu1 %v972_v29  ;;  %1973 = vmatprep.mubr.msk.bf16.mxu1 %vm2503_vm2, %v2502_v9 }
 0x373   : > { %1983 = vmatprep.subr.bf16.mxu1 %v2502_v9 }
 0x374   : > { %v1080_v32 = vpop.permute.xlu1 %1079 }
 0x378   : > { %v1197_v34 = vpop.permute.xlu1 %1196 }
 0x379   : > { %1974 = vmatmul.mubr.msk.bf16.vlgmr.msra.gmra.mrb[4].mxu1 %vm851_vm3, %v965_v31  ;;  %v1202_v35 = vsel %vm851_vm3, %v1197_v34, 0 }
 0x37a   : > { %1984 = vmatpush3.bf16.xpose.msra.mxu1 %v1087_v33  ;;  %1985 = vmatprep.mubr.msk.bf16.mxu1 %vm2503_vm2, %v2502_v9 }
 0x37b   : > { %1995 = vmatprep.subr.bf16.mxu1 %v2502_v9 }
 0x37c   : > { %v1195_v36 = vpop.permute.xlu1 %1194 }
 0x381   : > { %1986 = vmatmul.mubr.msk.bf16.vlgmr.msra.gmra.mrb[8].mxu1 %vm851_vm3, %v1080_v32 }
 0x382   : > { %1996 = vmatpush3.bf16.xpose.msra.mxu1 %v1202_v35  ;;  %1997 = vmatprep.mubr.msk.bf16.mxu1 %vm2503_vm2, %v2502_v9 }
 0x383   : > { %2007 = vmatprep.subr.bf16.mxu1 %v2502_v9 }
 0x389   : > { %1998 = vmatmul.mubr.msk.bf16.vlgmr.msra.gmra.mrb[12].mxu1 %vm851_vm3, %v1195_v36 }
 0x38a   : > { %2011 = vmatprep.mubr.msk.bf16.mxu1 %vm2503_vm2, %v2502_v9 }
 0x444   : > { %v892_v37 = vpop.f32.mrb[0].mxu1 }
 0x445   : > { %v1963_v38 = vpop.f32.mrb[1].mxu1  ;;  %v898_v39 = vsel %vm851_vm3, %v892_v37, -inf }
 0x446   : > { %899 = vmax.xlane.f32.xlu1 %v898_v39  ;;  %v895_v40 = vpop.f32.mrb[2].mxu1 }
 0x447   : > { %v1964_v41 = vpop.f32.mrb[3].mxu1 }
 0x44c   : > { %v1008_v42 = vpop.f32.mrb[4].mxu1 }
 0x44d   : > { %v1975_v43 = vpop.f32.mrb[5].mxu1  ;;  %v1014_v44 = vsel %vm851_vm3, %v1008_v42, -inf }
 0x44e   : > { %1015 = vmax.xlane.f32.xlu0 %v1014_v44  ;;  %v1011_v45 = vpop.f32.mrb[6].mxu1 }
 0x44f   : > { %v1976_v46 = vpop.f32.mrb[7].mxu1 }
 0x454   : > { %v1123_v47 = vpop.f32.mrb[8].mxu1 }
 0x455   : > { %v1987_v48 = vpop.f32.mrb[9].mxu1  ;;  %v1129_v49 = vsel %vm851_vm3, %v1123_v47, -inf }
 0x456   : > { %1130 = vmax.xlane.f32.xlu1 %v1129_v49  ;;  %v1126_v50 = vpop.f32.mrb[10].mxu1 }
 0x457   : > { %v1988_v51 = vpop.f32.mrb[11].mxu1 }
 0x45c   : > { %v1238_v52 = vpop.f32.mrb[12].mxu1 }
 0x45d   : > { %v1999_v53 = vpop.f32.mrb[13].mxu1  ;;  %v1244_v54 = vsel %vm851_vm3, %v1238_v52, -inf }
 0x45e   : > { %1245 = vmax.xlane.f32.xlu0 %v1244_v54  ;;  %v1241_v55 = vpop.f32.mrb[14].mxu1 }
 0x45f   : > { %v2000_v56 = vpop.f32.mrb[15].mxu1 }
 0x4d3   : > { %v900_v57 = vpop.xlane.xlu1 %899 }
 0x4d4   : > { %v901_v58 = vsub.f32 %v892_v37, %v900_v57  ;;  %v907_v15 = vsub.f32 0.0, %v900_v57 }
 0x4d6   : > { %v902_v59 = vmul.f32 1.442695, %v901_v58  ;;  %v908_v16 = vmul.f32 1.442695, %v907_v15 }
 0x4d8   : > { %2185 = vpow2.f32 %v902_v59 }
 0x4db   : > { %v1016_v60 = vpop.xlane.xlu0 %1015 }
 0x4dc   : > { %v1017_v61 = vsub.f32 %v1008_v42, %v1016_v60  ;;  %v1023_v17 = vsub.f32 0.0, %v1016_v60 }
 0x4de   : > { %v1018_v62 = vmul.f32 1.442695, %v1017_v61  ;;  %v1024_v18 = vmul.f32 1.442695, %v1023_v17 }
 0x4e0   : > { %2187 = vpow2.f32 %v1018_v62 }
 0x4e2   : > { %v2186_v63 = vpop.eup %2185 }
 0x4e3   : > { %v904_v0 = vsel %vm851_vm3, %v2186_v63, 0.0  ;;  %v1131_v10 = vpop.xlane.xlu1 %1130 }
 0x4e4   : > { %905 = vadd.xlane.f32.xlu1 %v904_v0  ;;  %v1132_v11 = vsub.f32 %v1123_v47, %v1131_v10  ;;  %v1138_v37 = vsub.f32 0.0, %v1131_v10 }
 0x4e6   : > { %v1133_v12 = vmul.f32 1.442695, %v1132_v11  ;;  %v1139_v40 = vmul.f32 1.442695, %v1138_v37 }
 0x4ea   : > { %v2188_v2 = vpop.eup %2187 }
 0x4eb   : > { %v3038_v3 = vpop.xlane.xlu0 %1245  ;;  %v1020_v4 = vsel %vm851_vm3, %v2188_v2, 0.0 }
 0x4ec   : > { %v1247_v5 = vsub.f32 %v1238_v52, %v3038_v3  ;;  %1021 = vadd.xlane.f32.xlu0 %v1020_v4  ;;  %v1253_v39 = vsub.f32 0.0, %v3038_v3  ;;  %v2175_v4 = vld [vmem:[%s2956_s15] sm:$0xff]  }
 0x4ed   : > { %2008 = vmatpush3.bf16.msra.mxu1 %v2175_v4 }
 0x4ee   : > { %v1248_v6 = vmul.f32 1.442695, %v1247_v5  ;;  %v1254_v41 = vmul.f32 1.442695, %v1253_v39  ;;  %v2176_v5 = vld [vmem:[%s2956_s15 + $0x8] sm:$0xff]   ;;  %2009 = vmatprep.subr.bf16.mxu1 %v2502_v9  ;;  %s3291_s15 = scalar_lea.vmem [#allocation6], %s2923_s8 }
 0x4ef   : > { %s3295_s8 = sld [smem:[#allocation20_spill]] }
 0x4f0   : > { %2189 = vpow2.f32 %v1248_v6 }
 0x4f1   : > { %2191 = vpow2.f32 %v1133_v12  ;;  %2010 = vmatpush3.bf16.msra.mxu1 %v2176_v5 }
 0x4f2   : > { %2193 = vpow2.f32 %v908_v16  ;;  %2023 = vmatprep.subr.bf16.mxu1 %v2502_v9 }
 0x4f3   : > { %2195 = vpow2.f32 %v1024_v18 }
 0x4f5   : > { %915 = vrot.lane.b32.xlu1 %v3003_v22, %s2511_s22  ;;  %p1910_p7 = scmp.ne.s32.totalorder %s3295_s8, 1 }
 0x4f6   : > { %s3297_s7 = sld [smem:[#allocation43_spill]] (!%p1910_p7) }
 0x4fa   : > { %v3043_v7 = vpop.eup %2189 }
 0x4fb   : > { %v1250_v8 = vsel %vm851_vm3, %v3043_v7, 0.0  ;;  %v3048_v13 = vpop.eup %2191 }
 0x4fc   : > { %1251 = vadd.xlane.f32.xlu0 %v1250_v8  ;;  %v1135_v14 = vsel %vm851_vm3, %v3048_v13, 0.0  ;;  %v2194_v19 = vpop.eup %2193 }
 0x4fd   : > { %v910_v20 = vmul.f32 1e-08, %v2194_v19  ;;  %v2196_v25 = vpop.eup %2195 }
 0x512   : > { %1031 = vrot.lane.b32.xlu0 %v3003_v22, %s2512_s20 }
 0x519   : > { %1136 = vadd.xlane.f32.xlu1 %v1135_v14 }
 0x52a   : > { %1146 = vrot.lane.b32.xlu1 %v3003_v22, %s2513_s14 }
 0x52e   : > { %1261 = vrot.lane.b32.xlu1 %v3003_v22, %s2514_s6  ;;  %v1026_v22 = vmul.f32 1e-08, %v2196_v25 }
 0x571   : > { %v906_v21 = vpop.xlane.xlu1 %905 }
 0x572   : > { %v911_v23 = vadd.f32 %v910_v20, %v906_v21 }
 0x574   : > { %2197 = vrcp.f32 %v911_v23  ;;  %v1894_v23 = vld [vmem:[%s3291_s15] ss:$0 sm:$0xff] }
 0x575   : > { %v916_v24 = vpop.permute.xlu1 %915 }
 0x576   : > { %v922_v26 = vsel %vm920_vm4, %v916_v24, 0 }
 0x577   : > { %1966 = vmatpush3.bf16.msra.mxu0 %v922_v26 }
 0x578   : > { %1977 = vmatprep.subr.bf16.mxu0 %v2502_v9 }
 0x579   : > { %v1022_v27 = vpop.xlane.xlu0 %1021 }
 0x57a   : > { %v1027_v28 = vadd.f32 %v1026_v22, %v1022_v27 }
 0x57c   : > { %2199 = vrcp.f32 %v1027_v28 }
 0x57d   : > { %2201 = vpow2.f32 %v1139_v40  ;;  %v1898_v40 = vld [vmem:[%s3292_s24] ss:$0 sm:$0xff] }
 0x57e   : > { %v2198_v29 = vpop.eup %2197  ;;  %2203 = vpow2.f32 %v1254_v41 }
 0x57f   : > { %v913_v30 = vmul.f32 %v2198_v29, %v2186_v63 }
 0x581   : > { %v914_v31 = vpack.c.bf16 %v913_v30, %v913_v30 }
 0x583   : > { %1968 = vmatmul.mubr.msk.bf16.vlgmr.msra.gmra.mrb[4].mxu0 %vm851_vm3, %v914_v31 }
 0x584   : > { %1979 = vmatprep.mubr.msk.bf16.mxu0 %vm2503_vm2, %v2502_v9 }
 0x586   : > { %v2200_v32 = vpop.eup %2199 }
 0x587   : > { %v1029_v34 = vmul.f32 %v2200_v32, %v2188_v2  ;;  %v2202_v42 = vpop.eup %2201 }
 0x588   : > { %v2204_v43 = vpop.eup %2203  ;;  %v1141_v44 = vmul.f32 1e-08, %v2202_v42  ;;  %v1899_v42 = vld [vmem:[%s3293_s0] ss:$0 sm:$0xff] }
 0x589   : > { %v1252_v33 = vpop.xlane.xlu0 %1251  ;;  %v1030_v38 = vpack.c.bf16 %v1029_v34, %v1029_v34  ;;  %v1256_v46 = vmul.f32 1e-08, %v2204_v43 }
 0x58b   : > { %v1257_v48 = vadd.f32 %v1256_v46, %v1252_v33  ;;  %v2179_v46 = vld [vmem:[%s2966_s19] sm:$0xff]  }
 0x58d   : > { %v1032_v35 = vpop.permute.xlu0 %1031 }
 0x58e   : > { %v1037_v36 = vsel %vm920_vm4, %v1032_v35, 0  ;;  %v2177_v35 = vld [vmem:[%s2961_s9] sm:$0xff]  }
 0x58f   : > { %1978 = vmatpush3.bf16.msra.mxu0 %v1037_v36  ;;  %v2178_v36 = vld [vmem:[%s2961_s9 + $0x8] sm:$0xff]  }
 0x590   : > { %1989 = vmatprep.subr.bf16.mxu0 %v2502_v9 }
 0x592   : > { %1980 = vmatmul.mubr.msk.bf16.vlgmr.msra.gmra.mrb[8].mxu0 %vm851_vm3, %v1030_v38 }
 0x593   : > { %1991 = vmatprep.mubr.msk.bf16.mxu0 %vm2503_vm2, %v2502_v9 }
 0x5a6   : > { %v1137_v45 = vpop.xlane.xlu1 %1136 }
 0x5a7   : > { %v1142_v47 = vadd.f32 %v1141_v44, %v1137_v45 }
 0x5a9   : > { %2205 = vrcp.f32 %v1142_v47  ;;  %v2180_v47 = vld [vmem:[%s2966_s19 + $0x8] sm:$0xff]  }
 0x5aa   : > { %v1147_v49 = vpop.permute.xlu1 %1146  ;;  %2207 = vrcp.f32 %v1257_v48  ;;  %v2181_v48 = vld [vmem:[%s2966_s19 + $0x10] sm:$0xff]  }
 0x5ab   : > { %v1152_v50 = vsel %vm920_vm4, %v1147_v49, 0  ;;  %v2182_v49 = vld [vmem:[%s2966_s19 + $0x18] sm:$0xff]  }
 0x5ac   : > { %1990 = vmatpush3.bf16.msra.mxu0 %v1152_v50  ;;  %v1900_v50 = vld [vmem:[%s628_s26] ss:$0 sm:$0xff]  ;;  %s3296_s26 = sld [smem:[#allocation42_spill]] (!%p1910_p7) }
 0x5ad   : > { %2001 = vmatprep.subr.bf16.mxu0 %v2502_v9 }
 0x5ae   : > { %v1262_v53 = vpop.permute.xlu1 %1261 }
 0x5af   : > { %v1267_v56 = vsel %vm920_vm4, %v1262_v53, 0 }
 0x5b3   : > { %v2206_v51 = vpop.eup %2205 }
 0x5b4   : > { %v1144_v52 = vmul.f32 %v2206_v51, %v3048_v13  ;;  %v2208_v55 = vpop.eup %2207 }
 0x5b5   : > { %v1259_v57 = vmul.f32 %v2208_v55, %v3043_v7 }
 0x5b6   : > { %v1145_v54 = vpack.c.bf16 %v1144_v52, %v1144_v52 }
 0x5b7   : > { %v1260_v58 = vpack.c.bf16 %v1259_v57, %v1259_v57 }
 0x5b8   : > { %1992 = vmatmul.mubr.msk.bf16.vlgmr.msra.gmra.mrb[12].mxu0 %vm851_vm3, %v1145_v54 }
 0x5b9   : > { %2002 = vmatpush3.bf16.msra.mxu0 %v1267_v56  ;;  %2003 = vmatprep.mubr.msk.bf16.mxu0 %vm2503_vm2, %v2502_v9 }
 0x5ba   : > { %2015 = vmatprep.subr.bf16.mxu0 %v2502_v9 }
 0x5c0   : > { %2004 = vmatmul.mubr.msk.bf16.vlgmr.msra.gmra.mrb[16].mxu0 %vm851_vm3, %v1260_v58 }
 0x5c1   : > { %2019 = vmatprep.mubr.msk.bf16.mxu0 %vm2503_vm2, %v2502_v9  ;;  %2016 = vmatpush3.bf16.msra.mxu0 %v2177_v35 }
 0x5c2   : > { %2017 = vmatprep.subr.bf16.mxu0 %v2502_v9 }
 0x5c5   : > { %2018 = vmatpush3.bf16.msra.mxu0 %v2178_v36 }
 0x656   : > { %v958_v59 = vpop.f32.mrb[4].mxu0 }
 0x657   : > { %v1969_v60 = vpop.f32.mrb[5].mxu0 }
 0x658   : > { %v961_v61 = vpop.f32.mrb[6].mxu0 }
 0x659   : > { %v1970_v62 = vpop.f32.mrb[7].mxu0 }
 0x665   : > { %v1073_v63 = vpop.f32.mrb[8].mxu0 }
 0x666   : > { %1310 = vrot.lane.b32.xlu0 %v1073_v63, %s2515_s17  ;;  %v1981_v0 = vpop.f32.mrb[9].mxu0 }
 0x667   : > { %v1076_v2 = vpop.f32.mrb[10].mxu0 }
 0x668   : > { %v1982_v3 = vpop.f32.mrb[11].mxu0 }
 0x68b   : > { %v1188_v6 = vpop.f32.mrb[12].mxu0 }
 0x68c   : > { %1314 = vrot.lane.b32.xlu1 %v1188_v6, %s2516_s18  ;;  %v1993_v7 = vpop.f32.mrb[13].mxu0 }
 0x68d   : > { %v1191_v8 = vpop.f32.mrb[14].mxu0 }
 0x68e   : > { %v1994_v10 = vpop.f32.mrb[15].mxu0 }
 0x693   : > { %v1303_v11 = vpop.f32.mrb[16].mxu0 }
 0x694   : > { %1318 = vrot.lane.b32.xlu0 %v1303_v11, %s2517_s5  ;;  %v2005_v12 = vpop.f32.mrb[17].mxu0 }
 0x695   : > { %v1306_v13 = vpop.f32.mrb[18].mxu0 }
 0x696   : > { %v2006_v14 = vpop.f32.mrb[19].mxu0 }
 0x6d8   : > { %v1311_v15 = vpop.permute.xlu0 %1310 }
 0x6d9   : > { %v1321_v17 = vsel %vm851_vm3, %v958_v59, %v1311_v15 }
 0x6fe   : > { %v1315_v16 = vpop.permute.xlu1 %1314 }
 0x6ff   : > { %v1323_v18 = vsel %vm1322_vm5, %v1321_v17, %v1315_v16  ;;  %v1911_v16 = vld [vmem:[%s3296_s26] ss:$0 sm:$0xff] (!%p1910_p7) }
 0x706   : > { %v1319_v19 = vpop.permute.xlu0 %1318 }
 0x707   : > { %v1325_v20 = vsel %vm1324_vm6, %v1323_v18, %v1319_v19  ;;  %v1912_v18 = vld [vmem:[%s3297_s7] ss:$0 sm:$0xff] (!%p1910_p7) }
 0x708   : > { %v1326_v21 = vpack.c.bf16 %v1325_v20, %v1325_v20 }
 0x70a   : > { %2012 = vmatmul.mubr.msk.bf16.vlgmr.msra.gmra.mrb[16].mxu1 %vm758_vm1, %v1326_v21 }
 0x70b   : > { %2031 = vmatprep.mubr.msk.bf16.mxu1 %vm2503_vm2, %v2502_v9  ;;  %2024 = vmatpush3.bf16.msra.mxu1 %v2179_v46 }
 0x70c   : > { %2025 = vmatprep.subr.bf16.mxu1 %v2502_v9 }
 0x70f   : > { %2026 = vmatpush3.bf16.msra.mxu1 %v2180_v47 }
 0x710   : > { %2027 = vmatprep.subr.bf16.mxu1 %v2502_v9 }
 0x713   : > { %2028 = vmatpush3.bf16.msra.mxu1 %v2181_v48 }
 0x714   : > { %2029 = vmatprep.subr.bf16.mxu1 %v2502_v9  ;;  %v1904_v9 = vld [vmem:[%s746_s13] ss:$0 sm:$0xff] }
 0x717   : > { %2030 = vmatpush3.bf16.msra.mxu1 %v2182_v49 }
 0x7dd   : > { %v1387_v24 = vpop.f32.mrb[16].mxu1 }
 0x7de   : > { %v1388_v25 = vadd.f32 %v1894_v23, %v1387_v24  ;;  %v2013_v26 = vpop.f32.mrb[17].mxu1 }
 0x7df   : > { %v1390_v22 = vpop.f32.mrb[18].mxu1 }
 0x7e0   : > { %v1393_v27 = vadd.f32 %v1388_v25, %v2976_v1  ;;  %v2014_v28 = vpop.f32.mrb[19].mxu1 }
 0x7e2   : > { %v1396_v29 = vsel %vm758_vm1, %v1393_v27, 0.0 }
 0x7e3   : > { %1397 = vadd.xlane.f32.xlu1 %v1396_v29 }
 0x870   : > { %v1398_v30 = vpop.xlane.xlu1 %1397 }
 0x871   : > { %v1399_v31 = vmul.f32 0.03125, %v1398_v30 }
 0x873   : > { %v1400_v32 = vsub.f32 %v1393_v27, %v1399_v31 }
 0x875   : > { %v1401_v33 = vmul.f32 %v1400_v32, %v1400_v32 }
 0x877   : > { %v1402_v34 = vsel %vm758_vm1, %v1401_v33, 0.0 }
 0x878   : > { %1403 = vadd.xlane.f32.xlu0 %v1402_v34 }
 0x905   : > { %v1404_v1 = vpop.xlane.xlu0 %1403 }
 0x906   : > { %v1405_v37 = vmul.f32 0.03125, %v1404_v1 }
 0x908   : > { %v1406_v38 = vadd.f32 1e-05, %v1405_v37 }
 0x90a   : > { %2209 = vrsqrt.f32 %v1406_v38 }
 0x914   : > { %v2210_v39 = vpop.eup %2209 }
 0x915   : > { %v1408_v41 = vmul.f32 %v2210_v39, %v1400_v32 }
 0x917   : > { %v1415_v43 = vmul.f32 %v1898_v40, %v1408_v41 }
 0x919   : > { %v1422_v44 = vadd.f32 %v1899_v42, %v1415_v43 }
 0x91b   : > { %v1423_v45 = vpack.c.bf16 %v1422_v44, %v1422_v44 }
 0x91d   : > { %2020 = vmatmul.mubr.msk.bf16.vlgmr.msra.gmra.mrb[20].mxu0 %vm758_vm1, %v1423_v45 }
 0x9f0   : > { %v1484_v51 = vpop.f32.mrb[20].mxu0 }
 0x9f1   : > { %v1485_v52 = vadd.f32 %v1900_v50, %v1484_v51  ;;  %v2021_v53 = vpop.f32.mrb[21].mxu0 }
 0x9f2   : > { %v1487_v54 = vpop.f32.mrb[22].mxu0 }
 0x9f3   : > { %v1491_v55 = vmul.f32 0.70710677, %v1485_v52  ;;  %v2022_v56 = vpop.f32.mrb[23].mxu0  ;;  %v1490_v58 = vmul.f32 0.5, %v1485_v52 }
 0x9f5   : > { %2211 = verf.f32 %v1491_v55 }
 0x9ff   : > { %v2212_v57 = vpop.eup %2211 }
 0xa00   : > { %v1493_v59 = vadd.f32 1.0, %v2212_v57 }
 0xa02   : > { %v1494_v60 = vmul.f32 %v1493_v59, %v1490_v58 }
 0xa04   : > { %v1495_v61 = vpack.c.bf16 %v1494_v60, %v1494_v60 }
 0xa06   : > { %2032 = vmatmul.mubr.msk.bf16.vlgmr.msra.gmra.mrb[20].mxu1 %vm1535_vm7, %v1495_v61 }
 0xad8   : > { %1584 = sbr.rel (%p1910_p7) target bundleno = 3096 (0xc18), region = 104 }
 0xad9   : > { %v1573_v62 = vpop.f32.mrb[20].mxu1 }
 0xada   : > { %v1574_v63 = vadd.f32 %v1904_v9, %v1573_v62  ;;  %v2033_v0 = vpop.f32.mrb[21].mxu1 }
 0xadb   : > { %v1576_v2 = vpop.f32.mrb[22].mxu1 }
 0xadc   : > { %v1579_v3 = vadd.f32 %v1574_v63, %v1393_v27  ;;  %v2034_v4 = vpop.f32.mrb[23].mxu1 }
 0xade   : > { %1580 = vst.msk [vmem:[#allocation2] sm:$0xff] %vm758_vm1, %v1579_v3  ;;  %v1587_v5 = vsel (!%p1910_p7), %vm758_vm1, %v1579_v3, 0.0 }
 0xadf   : > { %1588 = vadd.xlane.f32.xlu0 %v1587_v5 }
 0xb6c   : > { %v1589_v6 = vpop.xlane.xlu0 %1588 }
 0xb6d   : > { %v1590_v7 = vmul.f32 0.03125, %v1589_v6 }
 0xb6f   : > { %v1591_v8 = vsub.f32 %v1579_v3, %v1590_v7 }
 0xb71   : > { %v1592_v10 = vmul.f32 %v1591_v8, %v1591_v8 }
 0xb73   : > { %v1593_v11 = vsel %vm758_vm1, %v1592_v10, 0.0 }
 0xb74   : > { %1594 = vadd.xlane.f32.xlu0 %v1593_v11 }
 0xc01   : > { %v1595_v12 = vpop.xlane.xlu0 %1594 }
 0xc02   : > { %v1596_v13 = vmul.f32 0.03125, %v1595_v12 }
 0xc04   : > { %v1597_v14 = vadd.f32 1e-05, %v1596_v13 }
 0xc06   : > { %2213 = vrsqrt.f32 %v1597_v14 }
 0xc10   : > { %v2214_v15 = vpop.eup %2213 }
 0xc11   : > { %v1599_v17 = vmul.f32 %v2214_v15, %v1591_v8 }
 0xc13   : > { %v1606_v19 = vmul.f32 %v1911_v16, %v1599_v17 }
 0xc15   : > { %v1613_v20 = vadd.f32 %v1912_v18, %v1606_v19 }
 0xc17   : > { %1614 = vst.msk [vmem:[%s2973_s10] sm:$0xff] %vm758_vm1, %v1613_v20 }
 0xc18 PF: > { %s3298_s3 = sld [smem:[#allocation21_spill]]  ;;  %s3299_s29 = sld [smem:[#allocation44_spill]] }
 0xc19   : > { %s1629_s20 = sshll.u32 %s2973_s10, 4  ;;  %s1616_s6 = scalar_lea.sflag [#allocation5], %s2913_s21  ;;  %s1630_s20 = int_to_ptr.vmem [resolvable:$true] %s1629_s20 }
 0xc1a   : > { %s2365_s17 = scalar_lea.vmem %s1630_s20, 128  ;;  %p3301_p13 = scmp.ne.s32.totalorder %s3264_s28, 0 }
 0xc1b   : > { %p2366_p12 = scmp.ne.s32.totalorder %s1630_s20, %s2365_s17  ;;  %s2518_s18 = smov [#allocation12]  }
 0xc1c   : > { %s2369_s5 = sshll.u32 %s2518_s18, 4  ;;  %s2370_s5 = int_to_ptr.vmem [resolvable:$false] %s2369_s5 }
 0xc1d   : > { %p2367_p0 = pnand %p2366_p12, %p3301_p13  ;;  %s2371_s15 = scalar_lea.vmem %s2370_s5, 256 }
 0xc1e   : > { %s1914_s2 = sshll.u32 %s3298_s3, 7  ;;  %s3300_s14 = smov %s3299_s29 }
 0xc1f   : > { %s3128_s22 = scalar_lea.hbm %s3299_s29, %s1914_s2  ;;  %p2368_p4 = pneg %p2367_p0 }
 0xc20   : > { %p2372_p1 = scmp.lt.s32.totalorder %s1630_s20, %s2370_s5  ;;  %p2373_p3 = scmp.lt.s32.totalorder %s2371_s15, %s2365_s17 }
 0xc22   : > { %p2374_p5 = por %p2373_p3, %p2372_p1 }
 0xc24   : > { %p2375_p10 = pnand %p2374_p5, %p2368_p4 }
 0xc26   : > { %2378 = shalt.err (!%p2375_p10)
}
 0xc27   : > { %s2379_s21 = scalar_lea.hbm %s3128_s22, 128  ;;  %s2383_s0 = scalar_lea.hbm %s3300_s14, 256 }
 0xc28   : > { %p2380_p8 = scmp.ne.s32.totalorder %s3128_s22, %s2379_s21  ;;  %p2384_p2 = scmp.lt.u32.totalorder %s3128_s22, %s3300_s14 }
 0xc29   : > { %p2385_p6 = scmp.lt.u32.totalorder %s2383_s0, %s2379_s21  ;;  %p2387_p12 = scmp.lt.u32.totalorder %s2379_s21, %s3128_s22 }
 0xc2a   : > { %p2381_p11 = pnand %p2380_p8, %p3301_p13 }
 0xc2b   : > { %p2386_p7 = por %p2385_p6, %p2384_p2 }
 0xc2c   : > { %p2382_p9 = pneg %p2381_p11 }
 0xc2d   : > { %p2388_p0 = por %p2387_p12, %p2386_p7 }
 0xc2f   : > { %p2389_p4 = pnand %p2388_p0, %p2382_p9 }
 0xc31   : > { %2392 = shalt.err (!%p2389_p4)
}
 0xc32   : > { %2045 = dma.vmem_to_hbm [thread:$0]  (%p3301_p13), %s1630_s20, 128, %s3128_s22, %s1616_s6  }
 0xc33 PF: > { %s3302_s1 = sld [smem:[#allocation29_spill]]  ;;  %p2068_p1 = scmp.ge.s32.totalorder %s2495_s23, 2 }
 0xc34   : > { %s1641_s8 = sand.u32 1, %s2467_s16  }
 0xc35   : > { %s1642_s4 = scalar_lea.sflag [#allocation5], %s1641_s8 }
 0xc39   : > { %p3303_p3 = scmp.ne.s32.totalorder %s3302_s1, 0 }
 0xc3b   : > { %p2064_p5 = pnand %p2068_p1, %p3303_p3 }
 0xc3d   : > { %2450 = dma.done.wait (!%p2064_p5), %s1642_s4, 128  }
 0xc3e   : > { %2452 = vsyncadd (!%p2064_p5), %s1642_s4, 4294967168  ;;  %s36_s23 = sadd.s32 1, %s2495_s23   ;;  %s3304_s13 = sld [smem:[#allocation17_spill]] }
 0xc3f   : > { %p33_p10 = scmp.ge.s32.totalorder %s36_s23, 6   ;;  %s3305_s15 = sld [smem:[#allocation25_spill]] }
 0xc40   : > { %s3306_s16 = sld [smem:[#allocation18_spill]]  ;;  %s3307_s17 = sld [smem:[#allocation19_spill]] }
 0xc41   : > { %s3308_s18 = sld [smem:[#allocation28_spill]]  ;;  %s3309_s19 = sld [smem:[#allocation22_spill]] }
 0xc42   : > { %s3310_s20 = sld [smem:[#allocation23_spill]]  ;;  %s3311_s21 = sld [smem:[#allocation24_spill]] }
 0xc43   : > { %s3312_s22 = sld [smem:[#allocation26_spill]]  ;;  %s3313_s29 = smov %s2459_s30 }
 0xc44   : > { %s3314_s30 = smov %s3304_s13  ;;  %35 = sbr.rel (!%p33_p10) target bundleno = 29 (0x1d), region = 198 }
 0xc4b   :  { %1647 = vsyncpa [#allocation4], 1 }
 0xc4c   :  { %1649 = vsyncpa [#allocation4 + $0x1], 1 }
 0xc4d   :  { %1650 = vsyncpa [#allocation7], 1 }
 0xc4e   :  { %1652 = vsyncpa [#allocation7 + $0x1], 1 }
 0xc4f   :  { %1653 = vsyncpa [#allocation10], 1 }
 0xc50   :  { %1655 = vsyncpa [#allocation10 + $0x1], 1 }
 0xc51   :  { %1656 = vsyncpa [#allocation5], 1 }
 0xc52   :  { %1658 = vsyncpa [#allocation5 + $0x1], 1 }

</bundles_post_ra>
